<compile_context>
chip_gen: v6e
topology: v6e:2x2x1
jax: 0.10.0
libtpu: 0.0.40
codegen_flags: <defaults>
</compile_context>

<pallas_src>
import math
import functools

import jax
import jax.numpy as jnp
from jax import lax
from jax.experimental import pallas as pl
from jax.experimental.pallas import tpu as pltpu


# ----------------------------- kernel helpers --------------------------------

def _gelu_exact(x):
    # PyTorch F.gelu default: 0.5 * x * (1 + erf(x / sqrt(2)))  (exact, not tanh approx)
    return 0.5 * x * (1.0 + lax.erf(x * (1.0 / math.sqrt(2.0))))


def _layernorm(x, g, b, eps):
    mu = jnp.mean(x, axis=-1, keepdims=True)
    var = jnp.mean((x - mu) ** 2, axis=-1, keepdims=True)  # biased var (PyTorch LayerNorm)
    return (x - mu) * lax.rsqrt(var + eps) * g + b


# ------------------------------- Pallas kernel -------------------------------

def _body_kernel(x_ref, win_ref, bin_ref, wout_ref, bout_ref,
                 w1_ref, b1_ref, w2_ref, b2_ref,
                 g1_ref, be1_ref, g2_ref, be2_ref,
                 o_ref, act_ref, *, nhead, eps):
    l = pl.program_id(1)

    # Load the activation block into the resident VMEM scratch on the first layer only.
    @pl.when(l == 0)
    def _():
        act_ref[...] = x_ref[...].astype(jnp.float32)

    Bb, S, D = act_ref.shape
    M = Bb * S
    dh = D // nhead
    scale = 1.0 / math.sqrt(dh)

    x3 = act_ref[...]                         # (Bb, S, D) f32 activation for this layer
    xm = x3.reshape(M, D)                     # flatten batch*seq -> large MXU M dim

    # --- self attention: packed QKV projection (weights pre-transposed: (D, 3D)) ---
    qkv = jnp.dot(xm, win_ref[0], preferred_element_type=jnp.float32) + bin_ref[0]
    q = qkv[:, :D] * scale                    # fold 1/sqrt(dh) into q once
    k = qkv[:, D:2 * D]
    v = qkv[:, 2 * D:]
    q3 = q.reshape(Bb, S, D)
    k3 = k.reshape(Bb, S, D)
    v3 = v.reshape(Bb, S, D)

    # Per-head attention; static unroll is fine for small nhead.  The 3-D einsums keep a
    # single batch dim so Mosaic lowers them as plain batched MXU matmuls (no XLU
    # transposes).
    heads = []
    for h in range(nhead):
        sl = slice(h * dh, (h + 1) * dh)
        qh, kh, vh = q3[..., sl], k3[..., sl], v3[..., sl]
        # TODO(synk): src_key_padding_mask (additive -inf on masked key columns) not wired in.
        s = jnp.einsum("bqd,bkd->bqk", qh, kh, preferred_element_type=jnp.float32)
        s = s - jnp.max(s, axis=-1, keepdims=True)
        p = jnp.exp(s)
        p = p * pl.reciprocal(jnp.sum(p, axis=-1, keepdims=True), approx=True)
        heads.append(jnp.einsum("bqk,bkd->bqd", p, vh,
                                preferred_element_type=jnp.float32))
    attn = jnp.concatenate(heads, axis=-1).reshape(M, D)

    # Single full-contraction output projection (wout pre-transposed: (D, D)).
    attn = jnp.dot(attn, wout_ref[0], preferred_element_type=jnp.float32) + bout_ref[0]

    # post-norm residual 1
    y = _layernorm(xm + attn, g1_ref[0], be1_ref[0], eps)

    # feed-forward: linear1 -> exact GELU -> linear2 (weights pre-transposed)
    h1 = jnp.dot(y, w1_ref[0], preferred_element_type=jnp.float32) + b1_ref[0]   # (M, F)
    h1 = _gelu_exact(h1)
    h2 = jnp.dot(h1, w2_ref[0], preferred_element_type=jnp.float32) + b2_ref[0]  # (M, D)

    # post-norm residual 2
    out3 = _layernorm(y + h2, g2_ref[0], be2_ref[0], eps).reshape(Bb, S, D)
    act_ref[...] = out3                       # stays resident for the next layer

    @pl.when(l == pl.num_programs(1) - 1)
    def _():
        o_ref[...] = out3.astype(o_ref.dtype)


# ------------------------------- wrapper --------------------------------------

def transformer_body_forward(x, packed, *, nhead, eps=1e-5, mask=None,
                             block_batch=None, vmem_limit_bytes=None):
    # TODO(synk): key-padding mask (src_key_padding_mask) path not implemented in-kernel.
    assert mask is None

    B, S, D = x.shape
    L = packed["win_t"].shape[0]
    F = packed["w1_t"].shape[-1]

    if block_batch is None:
        # Target ~256 rows (Bb*S) per block to fill the MXU M dimension; must divide B.
        bb = min(B, max(1, 256 // max(S, 1)))
        while B % bb:
            bb -= 1
    else:
        bb = block_batch
    nb = B // bb

    kernel = functools.partial(_body_kernel, nhead=nhead, eps=eps)

    def wspec(rows, cols):
        # per-layer weight slab: block is (1, rows, cols) at layer index l
        return pl.BlockSpec((1, rows, cols), lambda b, l: (l, 0, 0))

    in_specs = [
        pl.BlockSpec((bb, S, D), lambda b, l: (b, 0, 0)),   # x (read only at l == 0)
        wspec(D, 3 * D), wspec(1, 3 * D),                   # in_proj W^T, b
        wspec(D, D), wspec(1, D),                           # out_proj W^T, b
        wspec(D, F), wspec(1, F),                           # linear1 W^T, b
        wspec(F, D), wspec(1, D),                           # linear2 W^T, b
        wspec(1, D), wspec(1, D),                           # norm1 gamma, beta
        wspec(1, D), wspec(1, D),                           # norm2 gamma, beta
    ]

    return pl.pallas_call(
        kernel,
        out_shape=jax.ShapeDtypeStruct((B, S, D), x.dtype),
        grid_spec=pltpu.PrefetchScalarGridSpec(
            num_scalar_prefetch=0,
            grid=(nb, L),                                   # batch blocks outer, layers inner
            in_specs=in_specs,
            out_specs=pl.BlockSpec((bb, S, D), lambda b, l: (b, 0, 0)),
            scratch_shapes=[pltpu.VMEM((bb, S, D), jnp.float32)],  # resident activation
        ),
        compiler_params=pltpu.CompilerParams(
            dimension_semantics=("parallel", "arbitrary"),
            # Raise for production sizes (e.g. D=1024, F=4096) so full weight slabs stay
            # double-buffered; keep headroom under 64 MiB physical VMEM on v7x.
            vmem_limit_bytes=vmem_limit_bytes,
        ),
    )(x, packed["win_t"], packed["bin"], packed["wout_t"], packed["bout"],
      packed["w1_t"], packed["b1"], packed["w2_t"], packed["b2"],
      packed["g1"], packed["be1"], packed["g2"], packed["be2"])


# ------------------------------ parameters ------------------------------------

def init_params(key, num_layers, d_model, dim_ff):
    """Per-layer params in PyTorch layout (out_features, in_features)."""
    params = []
    for i in range(num_layers):
        ks = jax.random.split(jax.random.fold_in(key, i), 6)
        params.append(dict(
            win=jax.random.normal(ks[0], (3 * d_model, d_model), jnp.float32) * 0.05,
            bin=jax.random.normal(ks[1], (1, 3 * d_model), jnp.float32) * 0.01,
            wout=jax.random.normal(ks[2], (d_model, d_model), jnp.float32) * 0.05,
            bout=jnp.zeros((1, d_model), jnp.float32),
            w1=jax.random.normal(ks[3], (dim_ff, d_model), jnp.float32) * 0.05,
            b1=jax.random.normal(ks[4], (1, dim_ff), jnp.float32) * 0.01,
            w2=jax.random.normal(ks[5], (d_model, dim_ff), jnp.float32) * 0.05,
            b2=jnp.zeros((1, d_model), jnp.float32),
            g1=jnp.ones((1, d_model), jnp.float32),
            be1=jnp.zeros((1, d_model), jnp.float32),
            g2=jnp.ones((1, d_model), jnp.float32),
            be2=jnp.zeros((1, d_model), jnp.float32),
        ))
    return params


def pack_params(params):
    """Stack per-layer params along a leading L axis and pre-transpose weight matrices
    so the kernel computes x @ W_t with no in-kernel transposes."""
    def stk(name):
        return jnp.stack([p[name] for p in params])
    return dict(
        win_t=jnp.stack([p["win"].T for p in params]),    # (L, D, 3D)
        bin=stk("bin"),                                   # (L, 1, 3D)
        wout_t=jnp.stack([p["wout"].T for p in params]),  # (L, D, D)
        bout=stk("bout"),                                 # (L, 1, D)
        w1_t=jnp.stack([p["w1"].T for p in params]),      # (L, D, F)
        b1=stk("b1"),                                     # (L, 1, F)
        w2_t=jnp.stack([p["w2"].T for p in params]),      # (L, F, D)
        b2=stk("b2"),                                     # (L, 1, D)
        g1=stk("g1"), be1=stk("be1"), g2=stk("g2"), be2=stk("be2"),
    )


# ---------------------------- pure-JAX reference -------------------------------

def _ref_layer(x, p, nhead, eps):
    B, S, D = x.shape
    dh = D // nhead
    qkv = jnp.einsum("bsd,ed->bse", x, p["win"]) + p["bin"][0]
    q, k, v = jnp.split(qkv, 3, axis=-1)

    def heads(t):
        return t.reshape(B, S, nhead, dh).transpose(0, 2, 1, 3)

    q, k, v = heads(q), heads(k), heads(v)
    s = jnp.einsum("bhqd,bhkd->bhqk", q, k) / math.sqrt(dh)
    a = jax.nn.softmax(s, axis=-1)
    o = jnp.einsum("bhqk,bhkd->bhqd", a, v).transpose(0, 2, 1, 3).reshape(B, S, D)
    attn = jnp.einsum("bsd,ed->bse", o, p["wout"]) + p["bout"][0]
    y = _layernorm(x + attn, p["g1"][0], p["be1"][0], eps)
    h1 = _gelu_exact(jnp.einsum("bsd,fd->bsf", y, p["w1"]) + p["b1"][0])
    h2 = jnp.einsum("bsf,df->bsd", h1, p["w2"]) + p["b2"][0]
    return _layernorm(y + h2, p["g2"][0], p["be2"][0], eps)


def _ref_forward(x, params, nhead, eps=1e-5):
    out = x
    for p in params:
        out = _ref_layer(out, p, nhead, eps)
    return out


# --------------------------------- main ---------------------------------------

if __name__ == "__main__":
    # Module config (small, consistent with TransformerBodyLayer defaults):
    d_model, nhead, num_layers, dim_ff = 32, 4, 2, 64
    B, S = 2, 8

    key = jax.random.PRNGKey(0)
    kx, kp = jax.random.split(key)
    x = jax.random.normal(kx, (B, S, d_model), jnp.float32)
    params = init_params(kp, num_layers, d_model, dim_ff)
    packed = pack_params(params)

    out = transformer_body_forward(x, packed, nhead=nhead)
    out = jax.block_until_ready(out)

    ref = jax.block_until_ready(_ref_forward(x, params, nhead))
    assert out.shape == (B, S, d_model)
    assert bool(jnp.all(jnp.isfinite(out)))
    assert bool(jnp.allclose(out, ref, atol=2e-2, rtol=2e-2))

    print("KERNEL_OK")
</pallas_src>

<mosaic_0001>
module attributes {stable_mosaic.version = 11 : i64} {
  func.func @_body_kernel(%arg0: i32, %arg1: i32, %arg2: memref<2x8x32xf32, #tpu.memory_space<vmem>>, %arg3: memref<1x32x96xf32, #tpu.memory_space<vmem>>, %arg4: memref<1x1x96xf32, #tpu.memory_space<vmem>>, %arg5: memref<1x32x32xf32, #tpu.memory_space<vmem>>, %arg6: memref<1x1x32xf32, #tpu.memory_space<vmem>>, %arg7: memref<1x32x64xf32, #tpu.memory_space<vmem>>, %arg8: memref<1x1x64xf32, #tpu.memory_space<vmem>>, %arg9: memref<1x64x32xf32, #tpu.memory_space<vmem>>, %arg10: memref<1x1x32xf32, #tpu.memory_space<vmem>>, %arg11: memref<1x1x32xf32, #tpu.memory_space<vmem>>, %arg12: memref<1x1x32xf32, #tpu.memory_space<vmem>>, %arg13: memref<1x1x32xf32, #tpu.memory_space<vmem>>, %arg14: memref<1x1x32xf32, #tpu.memory_space<vmem>>, %arg15: memref<2x8x32xf32, #tpu.memory_space<vmem>>, %arg16: memref<2x8x32xf32, #tpu.memory_space<vmem>>) attributes {dimension_semantics = [#tpu.dimension_semantics<parallel>, #tpu.dimension_semantics<arbitrary>], iteration_bounds = array<i64: 1, 2>, scalar_prefetch = 0 : i64, scratch_operands = 1 : i64, tpu.core_type = #tpu.core_type<tc>, window_params = [{transform_indices = @transform_0, window_bounds = array<i64: 2, 8, 32>}, {transform_indices = @transform_1, window_bounds = array<i64: 1, 32, 96>}, {transform_indices = @transform_2, window_bounds = array<i64: 1, 1, 96>}, {transform_indices = @transform_3, window_bounds = array<i64: 1, 32, 32>}, {transform_indices = @transform_4, window_bounds = array<i64: 1, 1, 32>}, {transform_indices = @transform_5, window_bounds = array<i64: 1, 32, 64>}, {transform_indices = @transform_6, window_bounds = array<i64: 1, 1, 64>}, {transform_indices = @transform_7, window_bounds = array<i64: 1, 64, 32>}, {transform_indices = @transform_8, window_bounds = array<i64: 1, 1, 32>}, {transform_indices = @transform_9, window_bounds = array<i64: 1, 1, 32>}, {transform_indices = @transform_10, window_bounds = array<i64: 1, 1, 32>}, {transform_indices = @transform_11, window_bounds = array<i64: 1, 1, 32>}, {transform_indices = @transform_12, window_bounds = array<i64: 1, 1, 32>}, {transform_indices = @transform_13, window_bounds = array<i64: 2, 8, 32>}]} {
    %c0_i32 = arith.constant 0 : i32
    %0 = arith.cmpi eq, %arg1, %c0_i32 : i32
    %1 = arith.extui %0 : i1 to i32
    %c0_i32_0 = arith.constant 0 : i32
    %2 = arith.cmpi ne, %1, %c0_i32_0 : i32
    scf.if %2 {
      %c0_76 = arith.constant 0 : index
      %c0_77 = arith.constant 0 : index
      %c0_78 = arith.constant 0 : index
      %170 = vector.load %arg2[%c0_76, %c0_77, %c0_78] : memref<2x8x32xf32, #tpu.memory_space<vmem>>, vector<2x8x32xf32>
      %c0_79 = arith.constant 0 : index
      %c0_80 = arith.constant 0 : index
      %c0_81 = arith.constant 0 : index
      %171 = vector.load %arg16[%c0_79, %c0_80, %c0_81] : memref<2x8x32xf32, #tpu.memory_space<vmem>>, vector<2x8x32xf32>
      tpu.vector_store %arg16[%c0_79, %c0_80, %c0_81], %170 {strides = array<i32>} : memref<2x8x32xf32, #tpu.memory_space<vmem>>, vector<2x8x32xf32>,
    } else {
    }
    %c0 = arith.constant 0 : index
    %c0_1 = arith.constant 0 : index
    %c0_2 = arith.constant 0 : index
    %3 = vector.load %arg16[%c0, %c0_1, %c0_2] : memref<2x8x32xf32, #tpu.memory_space<vmem>>, vector<2x8x32xf32>
    %4 = vector.shape_cast %3 : vector<2x8x32xf32> to vector<16x32xf32>
    %c0_3 = arith.constant 0 : index
    %c0_4 = arith.constant 0 : index
    %c0_5 = arith.constant 0 : index
    %5 = vector.load %arg3[%c0_3, %c0_4, %c0_5] : memref<1x32x96xf32, #tpu.memory_space<vmem>>, vector<1x32x96xf32>
    %6 = vector.shape_cast %5 : vector<1x32x96xf32> to vector<32x96xf32>
    %cst = arith.constant dense<0.000000e+00> : vector<16x96xf32>
    %7 = tpu.matmul %4, %6, %cst {dimension_numbers = #tpu.dot_dimension_numbers<[1], [0], [0], [1], [0, 0, 1, 1], [], []>} : vector<16x32xf32>, vector<32x96xf32>, vector<16x96xf32> -> vector<16x96xf32>
    %c0_6 = arith.constant 0 : index
    %c0_7 = arith.constant 0 : index
    %c0_8 = arith.constant 0 : index
    %8 = vector.load %arg4[%c0_6, %c0_7, %c0_8] : memref<1x1x96xf32, #tpu.memory_space<vmem>>, vector<1x1x96xf32>
    %9 = vector.shape_cast %8 : vector<1x1x96xf32> to vector<1x96xf32>
    %10 = vector.broadcast %9 : vector<1x96xf32> to vector<16x96xf32>
    %11 = arith.addf %7, %10 : vector<16x96xf32>
    %12 = vector.extract_strided_slice %11 {offsets = [0, 0], sizes = [16, 32], strides = [1, 1]} : vector<16x96xf32> to vector<16x32xf32>
    %cst_9 = arith.constant 0.353553385 : f32
    %13 = vector.broadcast %cst_9 : f32 to vector<16x32xf32>
    %14 = arith.mulf %12, %13 : vector<16x32xf32>
    %15 = vector.extract_strided_slice %11 {offsets = [0, 32], sizes = [16, 32], strides = [1, 1]} : vector<16x96xf32> to vector<16x32xf32>
    %16 = vector.extract_strided_slice %11 {offsets = [0, 64], sizes = [16, 32], strides = [1, 1]} : vector<16x96xf32> to vector<16x32xf32>
    %17 = vector.shape_cast %14 : vector<16x32xf32> to vector<2x8x32xf32>
    %18 = vector.shape_cast %15 : vector<16x32xf32> to vector<2x8x32xf32>
    %19 = vector.shape_cast %16 : vector<16x32xf32> to vector<2x8x32xf32>
    %20 = vector.extract_strided_slice %17 {offsets = [0, 0, 0], sizes = [2, 8, 8], strides = [1, 1, 1]} : vector<2x8x32xf32> to vector<2x8x8xf32>
    %21 = vector.extract_strided_slice %18 {offsets = [0, 0, 0], sizes = [2, 8, 8], strides = [1, 1, 1]} : vector<2x8x32xf32> to vector<2x8x8xf32>
    %22 = vector.extract_strided_slice %19 {offsets = [0, 0, 0], sizes = [2, 8, 8], strides = [1, 1, 1]} : vector<2x8x32xf32> to vector<2x8x8xf32>
    "tpu.trace_start"() <{level = 10 : i32, message = "bqd,bkd->bqk"}> : () -> ()
    %cst_10 = arith.constant dense<0.000000e+00> : vector<2x8x8xf32>
    %23 = tpu.matmul %20, %21, %cst_10 {dimension_numbers = #tpu.dot_dimension_numbers<[2], [2], [1], [1], [0, 0, 0, 1, 1, 1], [0], [0]>} : vector<2x8x8xf32>, vector<2x8x8xf32>, vector<2x8x8xf32> -> vector<2x8x8xf32>
    "tpu.trace_stop"() : () -> ()
    %cst_11 = arith.constant dense<0xFF800000> : vector<2x8xf32>
    %24 = vector.multi_reduction <maximumf>, %23, %cst_11 [2] : vector<2x8x8xf32> to vector<2x8xf32>
    %25 = vector.shape_cast %24 : vector<2x8xf32> to vector<2x8x1xf32>
    %26 = vector.broadcast %25 : vector<2x8x1xf32> to vector<2x8x8xf32>
    %27 = arith.subf %23, %26 : vector<2x8x8xf32>
    %28 = math.exp %27 : vector<2x8x8xf32>
    %cst_12 = arith.constant dense<0.000000e+00> : vector<2x8xf32>
    %29 = vector.multi_reduction <add>, %28, %cst_12 [2] : vector<2x8x8xf32> to vector<2x8xf32>
    %30 = vector.shape_cast %29 : vector<2x8xf32> to vector<2x8x1xf32>
    %31 = tpu.reciprocal %30 {approx = true} : vector<2x8x1xf32> -> vector<2x8x1xf32>
    %32 = vector.broadcast %31 : vector<2x8x1xf32> to vector<2x8x8xf32>
    %33 = arith.mulf %28, %32 : vector<2x8x8xf32>
    "tpu.trace_start"() <{level = 10 : i32, message = "bqk,bkd->bqd"}> : () -> ()
    %cst_13 = arith.constant dense<0.000000e+00> : vector<2x8x8xf32>
    %34 = tpu.matmul %33, %22, %cst_13 {dimension_numbers = #tpu.dot_dimension_numbers<[2], [1], [1], [2], [0, 0, 0, 1, 1, 2], [0], [0]>} : vector<2x8x8xf32>, vector<2x8x8xf32>, vector<2x8x8xf32> -> vector<2x8x8xf32>
    "tpu.trace_stop"() : () -> ()
    %35 = vector.extract_strided_slice %17 {offsets = [0, 0, 8], sizes = [2, 8, 8], strides = [1, 1, 1]} : vector<2x8x32xf32> to vector<2x8x8xf32>
    %36 = vector.extract_strided_slice %18 {offsets = [0, 0, 8], sizes = [2, 8, 8], strides = [1, 1, 1]} : vector<2x8x32xf32> to vector<2x8x8xf32>
    %37 = vector.extract_strided_slice %19 {offsets = [0, 0, 8], sizes = [2, 8, 8], strides = [1, 1, 1]} : vector<2x8x32xf32> to vector<2x8x8xf32>
    "tpu.trace_start"() <{level = 10 : i32, message = "bqd,bkd->bqk"}> : () -> ()
    %cst_14 = arith.constant dense<0.000000e+00> : vector<2x8x8xf32>
    %38 = tpu.matmul %35, %36, %cst_14 {dimension_numbers = #tpu.dot_dimension_numbers<[2], [2], [1], [1], [0, 0, 0, 1, 1, 1], [0], [0]>} : vector<2x8x8xf32>, vector<2x8x8xf32>, vector<2x8x8xf32> -> vector<2x8x8xf32>
    "tpu.trace_stop"() : () -> ()
    %cst_15 = arith.constant dense<0xFF800000> : vector<2x8xf32>
    %39 = vector.multi_reduction <maximumf>, %38, %cst_15 [2] : vector<2x8x8xf32> to vector<2x8xf32>
    %40 = vector.shape_cast %39 : vector<2x8xf32> to vector<2x8x1xf32>
    %41 = vector.broadcast %40 : vector<2x8x1xf32> to vector<2x8x8xf32>
    %42 = arith.subf %38, %41 : vector<2x8x8xf32>
    %43 = math.exp %42 : vector<2x8x8xf32>
    %cst_16 = arith.constant dense<0.000000e+00> : vector<2x8xf32>
    %44 = vector.multi_reduction <add>, %43, %cst_16 [2] : vector<2x8x8xf32> to vector<2x8xf32>
    %45 = vector.shape_cast %44 : vector<2x8xf32> to vector<2x8x1xf32>
    %46 = tpu.reciprocal %45 {approx = true} : vector<2x8x1xf32> -> vector<2x8x1xf32>
    %47 = vector.broadcast %46 : vector<2x8x1xf32> to vector<2x8x8xf32>
    %48 = arith.mulf %43, %47 : vector<2x8x8xf32>
    "tpu.trace_start"() <{level = 10 : i32, message = "bqk,bkd->bqd"}> : () -> ()
    %cst_17 = arith.constant dense<0.000000e+00> : vector<2x8x8xf32>
    %49 = tpu.matmul %48, %37, %cst_17 {dimension_numbers = #tpu.dot_dimension_numbers<[2], [1], [1], [2], [0, 0, 0, 1, 1, 2], [0], [0]>} : vector<2x8x8xf32>, vector<2x8x8xf32>, vector<2x8x8xf32> -> vector<2x8x8xf32>
    "tpu.trace_stop"() : () -> ()
    %50 = vector.extract_strided_slice %17 {offsets = [0, 0, 16], sizes = [2, 8, 8], strides = [1, 1, 1]} : vector<2x8x32xf32> to vector<2x8x8xf32>
    %51 = vector.extract_strided_slice %18 {offsets = [0, 0, 16], sizes = [2, 8, 8], strides = [1, 1, 1]} : vector<2x8x32xf32> to vector<2x8x8xf32>
    %52 = vector.extract_strided_slice %19 {offsets = [0, 0, 16], sizes = [2, 8, 8], strides = [1, 1, 1]} : vector<2x8x32xf32> to vector<2x8x8xf32>
    "tpu.trace_start"() <{level = 10 : i32, message = "bqd,bkd->bqk"}> : () -> ()
    %cst_18 = arith.constant dense<0.000000e+00> : vector<2x8x8xf32>
    %53 = tpu.matmul %50, %51, %cst_18 {dimension_numbers = #tpu.dot_dimension_numbers<[2], [2], [1], [1], [0, 0, 0, 1, 1, 1], [0], [0]>} : vector<2x8x8xf32>, vector<2x8x8xf32>, vector<2x8x8xf32> -> vector<2x8x8xf32>
    "tpu.trace_stop"() : () -> ()
    %cst_19 = arith.constant dense<0xFF800000> : vector<2x8xf32>
    %54 = vector.multi_reduction <maximumf>, %53, %cst_19 [2] : vector<2x8x8xf32> to vector<2x8xf32>
    %55 = vector.shape_cast %54 : vector<2x8xf32> to vector<2x8x1xf32>
    %56 = vector.broadcast %55 : vector<2x8x1xf32> to vector<2x8x8xf32>
    %57 = arith.subf %53, %56 : vector<2x8x8xf32>
    %58 = math.exp %57 : vector<2x8x8xf32>
    %cst_20 = arith.constant dense<0.000000e+00> : vector<2x8xf32>
    %59 = vector.multi_reduction <add>, %58, %cst_20 [2] : vector<2x8x8xf32> to vector<2x8xf32>
    %60 = vector.shape_cast %59 : vector<2x8xf32> to vector<2x8x1xf32>
    %61 = tpu.reciprocal %60 {approx = true} : vector<2x8x1xf32> -> vector<2x8x1xf32>
    %62 = vector.broadcast %61 : vector<2x8x1xf32> to vector<2x8x8xf32>
    %63 = arith.mulf %58, %62 : vector<2x8x8xf32>
    "tpu.trace_start"() <{level = 10 : i32, message = "bqk,bkd->bqd"}> : () -> ()
    %cst_21 = arith.constant dense<0.000000e+00> : vector<2x8x8xf32>
    %64 = tpu.matmul %63, %52, %cst_21 {dimension_numbers = #tpu.dot_dimension_numbers<[2], [1], [1], [2], [0, 0, 0, 1, 1, 2], [0], [0]>} : vector<2x8x8xf32>, vector<2x8x8xf32>, vector<2x8x8xf32> -> vector<2x8x8xf32>
    "tpu.trace_stop"() : () -> ()
    %65 = vector.extract_strided_slice %17 {offsets = [0, 0, 24], sizes = [2, 8, 8], strides = [1, 1, 1]} : vector<2x8x32xf32> to vector<2x8x8xf32>
    %66 = vector.extract_strided_slice %18 {offsets = [0, 0, 24], sizes = [2, 8, 8], strides = [1, 1, 1]} : vector<2x8x32xf32> to vector<2x8x8xf32>
    %67 = vector.extract_strided_slice %19 {offsets = [0, 0, 24], sizes = [2, 8, 8], strides = [1, 1, 1]} : vector<2x8x32xf32> to vector<2x8x8xf32>
    "tpu.trace_start"() <{level = 10 : i32, message = "bqd,bkd->bqk"}> : () -> ()
    %cst_22 = arith.constant dense<0.000000e+00> : vector<2x8x8xf32>
    %68 = tpu.matmul %65, %66, %cst_22 {dimension_numbers = #tpu.dot_dimension_numbers<[2], [2], [1], [1], [0, 0, 0, 1, 1, 1], [0], [0]>} : vector<2x8x8xf32>, vector<2x8x8xf32>, vector<2x8x8xf32> -> vector<2x8x8xf32>
    "tpu.trace_stop"() : () -> ()
    %cst_23 = arith.constant dense<0xFF800000> : vector<2x8xf32>
    %69 = vector.multi_reduction <maximumf>, %68, %cst_23 [2] : vector<2x8x8xf32> to vector<2x8xf32>
    %70 = vector.shape_cast %69 : vector<2x8xf32> to vector<2x8x1xf32>
    %71 = vector.broadcast %70 : vector<2x8x1xf32> to vector<2x8x8xf32>
    %72 = arith.subf %68, %71 : vector<2x8x8xf32>
    %73 = math.exp %72 : vector<2x8x8xf32>
    %cst_24 = arith.constant dense<0.000000e+00> : vector<2x8xf32>
    %74 = vector.multi_reduction <add>, %73, %cst_24 [2] : vector<2x8x8xf32> to vector<2x8xf32>
    %75 = vector.shape_cast %74 : vector<2x8xf32> to vector<2x8x1xf32>
    %76 = tpu.reciprocal %75 {approx = true} : vector<2x8x1xf32> -> vector<2x8x1xf32>
    %77 = vector.broadcast %76 : vector<2x8x1xf32> to vector<2x8x8xf32>
    %78 = arith.mulf %73, %77 : vector<2x8x8xf32>
    "tpu.trace_start"() <{level = 10 : i32, message = "bqk,bkd->bqd"}> : () -> ()
    %cst_25 = arith.constant dense<0.000000e+00> : vector<2x8x8xf32>
    %79 = tpu.matmul %78, %67, %cst_25 {dimension_numbers = #tpu.dot_dimension_numbers<[2], [1], [1], [2], [0, 0, 0, 1, 1, 2], [0], [0]>} : vector<2x8x8xf32>, vector<2x8x8xf32>, vector<2x8x8xf32> -> vector<2x8x8xf32>
    "tpu.trace_stop"() : () -> ()
    %80 = tpu.concatenate %34, %49, %64, %79 in 2 : vector<2x8x8xf32>, vector<2x8x8xf32>, vector<2x8x8xf32>, vector<2x8x8xf32> -> vector<2x8x32xf32>
    %81 = vector.shape_cast %80 : vector<2x8x32xf32> to vector<16x32xf32>
    %c0_26 = arith.constant 0 : index
    %c0_27 = arith.constant 0 : index
    %c0_28 = arith.constant 0 : index
    %82 = vector.load %arg5[%c0_26, %c0_27, %c0_28] : memref<1x32x32xf32, #tpu.memory_space<vmem>>, vector<1x32x32xf32>
    %83 = vector.shape_cast %82 : vector<1x32x32xf32> to vector<32x32xf32>
    %cst_29 = arith.constant dense<0.000000e+00> : vector<16x32xf32>
    %84 = tpu.matmul %81, %83, %cst_29 {dimension_numbers = #tpu.dot_dimension_numbers<[1], [0], [0], [1], [0, 0, 1, 1], [], []>} : vector<16x32xf32>, vector<32x32xf32>, vector<16x32xf32> -> vector<16x32xf32>
    %c0_30 = arith.constant 0 : index
    %c0_31 = arith.constant 0 : index
    %c0_32 = arith.constant 0 : index
    %85 = vector.load %arg6[%c0_30, %c0_31, %c0_32] : memref<1x1x32xf32, #tpu.memory_space<vmem>>, vector<1x1x32xf32>
    %86 = vector.shape_cast %85 : vector<1x1x32xf32> to vector<1x32xf32>
    %87 = vector.broadcast %86 : vector<1x32xf32> to vector<16x32xf32>
    %88 = arith.addf %84, %87 : vector<16x32xf32>
    %89 = arith.addf %4, %88 : vector<16x32xf32>
    %c0_33 = arith.constant 0 : index
    %c0_34 = arith.constant 0 : index
    %c0_35 = arith.constant 0 : index
    %90 = vector.load %arg11[%c0_33, %c0_34, %c0_35] : memref<1x1x32xf32, #tpu.memory_space<vmem>>, vector<1x1x32xf32>
    %91 = vector.shape_cast %90 : vector<1x1x32xf32> to vector<1x32xf32>
    %c0_36 = arith.constant 0 : index
    %c0_37 = arith.constant 0 : index
    %c0_38 = arith.constant 0 : index
    %92 = vector.load %arg12[%c0_36, %c0_37, %c0_38] : memref<1x1x32xf32, #tpu.memory_space<vmem>>, vector<1x1x32xf32>
    %93 = vector.shape_cast %92 : vector<1x1x32xf32> to vector<1x32xf32>
    %cst_39 = arith.constant dense<0.000000e+00> : vector<16xf32>
    %94 = vector.multi_reduction <add>, %89, %cst_39 [1] : vector<16x32xf32> to vector<16xf32>
    %95 = vector.shape_cast %94 : vector<16xf32> to vector<16x1xf32>
    %cst_40 = arith.constant 3.200000e+01 : f32
    %96 = vector.broadcast %cst_40 : f32 to vector<16x1xf32>
    %97 = arith.divf %95, %96 : vector<16x1xf32>
    %98 = vector.broadcast %97 : vector<16x1xf32> to vector<16x32xf32>
    %99 = arith.subf %89, %98 : vector<16x32xf32>
    %100 = arith.mulf %99, %99 : vector<16x32xf32>
    %cst_41 = arith.constant dense<0.000000e+00> : vector<16xf32>
    %101 = vector.multi_reduction <add>, %100, %cst_41 [1] : vector<16x32xf32> to vector<16xf32>
    %102 = vector.shape_cast %101 : vector<16xf32> to vector<16x1xf32>
    %cst_42 = arith.constant 3.200000e+01 : f32
    %103 = vector.broadcast %cst_42 : f32 to vector<16x1xf32>
    %104 = arith.divf %102, %103 : vector<16x1xf32>
    %105 = vector.broadcast %97 : vector<16x1xf32> to vector<16x32xf32>
    %106 = arith.subf %89, %105 : vector<16x32xf32>
    %cst_43 = arith.constant 9.99999974E-6 : f32
    %107 = vector.broadcast %cst_43 : f32 to vector<16x1xf32>
    %108 = arith.addf %104, %107 : vector<16x1xf32>
    %109 = math.rsqrt %108 : vector<16x1xf32>
    %110 = vector.broadcast %109 : vector<16x1xf32> to vector<16x32xf32>
    %111 = arith.mulf %106, %110 : vector<16x32xf32>
    %112 = vector.broadcast %91 : vector<1x32xf32> to vector<16x32xf32>
    %113 = arith.mulf %111, %112 : vector<16x32xf32>
    %114 = vector.broadcast %93 : vector<1x32xf32> to vector<16x32xf32>
    %115 = arith.addf %113, %114 : vector<16x32xf32>
    %c0_44 = arith.constant 0 : index
    %c0_45 = arith.constant 0 : index
    %c0_46 = arith.constant 0 : index
    %116 = vector.load %arg7[%c0_44, %c0_45, %c0_46] : memref<1x32x64xf32, #tpu.memory_space<vmem>>, vector<1x32x64xf32>
    %117 = vector.shape_cast %116 : vector<1x32x64xf32> to vector<32x64xf32>
    %cst_47 = arith.constant dense<0.000000e+00> : vector<16x64xf32>
    %118 = tpu.matmul %115, %117, %cst_47 {dimension_numbers = #tpu.dot_dimension_numbers<[1], [0], [0], [1], [0, 0, 1, 1], [], []>} : vector<16x32xf32>, vector<32x64xf32>, vector<16x64xf32> -> vector<16x64xf32>
    %c0_48 = arith.constant 0 : index
    %c0_49 = arith.constant 0 : index
    %c0_50 = arith.constant 0 : index
    %119 = vector.load %arg8[%c0_48, %c0_49, %c0_50] : memref<1x1x64xf32, #tpu.memory_space<vmem>>, vector<1x1x64xf32>
    %120 = vector.shape_cast %119 : vector<1x1x64xf32> to vector<1x64xf32>
    %121 = vector.broadcast %120 : vector<1x64xf32> to vector<16x64xf32>
    %122 = arith.addf %118, %121 : vector<16x64xf32>
    %cst_51 = arith.constant 5.000000e-01 : f32
    %123 = vector.broadcast %cst_51 : f32 to vector<16x64xf32>
    %124 = arith.mulf %123, %122 : vector<16x64xf32>
    %cst_52 = arith.constant 0.707106769 : f32
    %125 = vector.broadcast %cst_52 : f32 to vector<16x64xf32>
    %126 = arith.mulf %122, %125 : vector<16x64xf32>
    %127 = math.erf %126 : vector<16x64xf32>
    %cst_53 = arith.constant 1.000000e+00 : f32
    %128 = vector.broadcast %cst_53 : f32 to vector<16x64xf32>
    %129 = arith.addf %128, %127 : vector<16x64xf32>
    %130 = arith.mulf %124, %129 : vector<16x64xf32>
    %c0_54 = arith.constant 0 : index
    %c0_55 = arith.constant 0 : index
    %c0_56 = arith.constant 0 : index
    %131 = vector.load %arg9[%c0_54, %c0_55, %c0_56] : memref<1x64x32xf32, #tpu.memory_space<vmem>>, vector<1x64x32xf32>
    %132 = vector.shape_cast %131 : vector<1x64x32xf32> to vector<64x32xf32>
    %cst_57 = arith.constant dense<0.000000e+00> : vector<16x32xf32>
    %133 = tpu.matmul %130, %132, %cst_57 {dimension_numbers = #tpu.dot_dimension_numbers<[1], [0], [0], [1], [0, 0, 1, 1], [], []>} : vector<16x64xf32>, vector<64x32xf32>, vector<16x32xf32> -> vector<16x32xf32>
    %c0_58 = arith.constant 0 : index
    %c0_59 = arith.constant 0 : index
    %c0_60 = arith.constant 0 : index
    %134 = vector.load %arg10[%c0_58, %c0_59, %c0_60] : memref<1x1x32xf32, #tpu.memory_space<vmem>>, vector<1x1x32xf32>
    %135 = vector.shape_cast %134 : vector<1x1x32xf32> to vector<1x32xf32>
    %136 = vector.broadcast %135 : vector<1x32xf32> to vector<16x32xf32>
    %137 = arith.addf %133, %136 : vector<16x32xf32>
    %138 = arith.addf %115, %137 : vector<16x32xf32>
    %c0_61 = arith.constant 0 : index
    %c0_62 = arith.constant 0 : index
    %c0_63 = arith.constant 0 : index
    %139 = vector.load %arg13[%c0_61, %c0_62, %c0_63] : memref<1x1x32xf32, #tpu.memory_space<vmem>>, vector<1x1x32xf32>
    %140 = vector.shape_cast %139 : vector<1x1x32xf32> to vector<1x32xf32>
    %c0_64 = arith.constant 0 : index
    %c0_65 = arith.constant 0 : index
    %c0_66 = arith.constant 0 : index
    %141 = vector.load %arg14[%c0_64, %c0_65, %c0_66] : memref<1x1x32xf32, #tpu.memory_space<vmem>>, vector<1x1x32xf32>
    %142 = vector.shape_cast %141 : vector<1x1x32xf32> to vector<1x32xf32>
    %cst_67 = arith.constant dense<0.000000e+00> : vector<16xf32>
    %143 = vector.multi_reduction <add>, %138, %cst_67 [1] : vector<16x32xf32> to vector<16xf32>
    %144 = vector.shape_cast %143 : vector<16xf32> to vector<16x1xf32>
    %cst_68 = arith.constant 3.200000e+01 : f32
    %145 = vector.broadcast %cst_68 : f32 to vector<16x1xf32>
    %146 = arith.divf %144, %145 : vector<16x1xf32>
    %147 = vector.broadcast %146 : vector<16x1xf32> to vector<16x32xf32>
    %148 = arith.subf %138, %147 : vector<16x32xf32>
    %149 = arith.mulf %148, %148 : vector<16x32xf32>
    %cst_69 = arith.constant dense<0.000000e+00> : vector<16xf32>
    %150 = vector.multi_reduction <add>, %149, %cst_69 [1] : vector<16x32xf32> to vector<16xf32>
    %151 = vector.shape_cast %150 : vector<16xf32> to vector<16x1xf32>
    %cst_70 = arith.constant 3.200000e+01 : f32
    %152 = vector.broadcast %cst_70 : f32 to vector<16x1xf32>
    %153 = arith.divf %151, %152 : vector<16x1xf32>
    %154 = vector.broadcast %146 : vector<16x1xf32> to vector<16x32xf32>
    %155 = arith.subf %138, %154 : vector<16x32xf32>
    %cst_71 = arith.constant 9.99999974E-6 : f32
    %156 = vector.broadcast %cst_71 : f32 to vector<16x1xf32>
    %157 = arith.addf %153, %156 : vector<16x1xf32>
    %158 = math.rsqrt %157 : vector<16x1xf32>
    %159 = vector.broadcast %158 : vector<16x1xf32> to vector<16x32xf32>
    %160 = arith.mulf %155, %159 : vector<16x32xf32>
    %161 = vector.broadcast %140 : vector<1x32xf32> to vector<16x32xf32>
    %162 = arith.mulf %160, %161 : vector<16x32xf32>
    %163 = vector.broadcast %142 : vector<1x32xf32> to vector<16x32xf32>
    %164 = arith.addf %162, %163 : vector<16x32xf32>
    %165 = vector.shape_cast %164 : vector<16x32xf32> to vector<2x8x32xf32>
    %c0_72 = arith.constant 0 : index
    %c0_73 = arith.constant 0 : index
    %c0_74 = arith.constant 0 : index
    %166 = vector.load %arg16[%c0_72, %c0_73, %c0_74] : memref<2x8x32xf32, #tpu.memory_space<vmem>>, vector<2x8x32xf32>
    tpu.vector_store %arg16[%c0_72, %c0_73, %c0_74], %165 {strides = array<i32>} : memref<2x8x32xf32, #tpu.memory_space<vmem>>, vector<2x8x32xf32>,
    %c1_i32 = arith.constant 1 : i32
    %167 = arith.cmpi eq, %arg1, %c1_i32 : i32
    %168 = arith.extui %167 : i1 to i32
    %c0_i32_75 = arith.constant 0 : i32
    %169 = arith.cmpi ne, %168, %c0_i32_75 : i32
    scf.if %169 {
      %c0_76 = arith.constant 0 : index
      %c0_77 = arith.constant 0 : index
      %c0_78 = arith.constant 0 : index
      %170 = vector.load %arg15[%c0_76, %c0_77, %c0_78] : memref<2x8x32xf32, #tpu.memory_space<vmem>>, vector<2x8x32xf32>
      tpu.vector_store %arg15[%c0_76, %c0_77, %c0_78], %165 {strides = array<i32>} : memref<2x8x32xf32, #tpu.memory_space<vmem>>, vector<2x8x32xf32>,
    } else {
    }
    return
  }
  func.func @transform_0(%arg0: i32, %arg1: i32) -> (i32, i32, i32) {
    %c0_i32 = arith.constant 0 : i32
    %c0_i32_0 = arith.constant 0 : i32
    %c0_i32_1 = arith.constant 0 : i32
    return %arg0, %c0_i32, %c0_i32_0 : i32, i32, i32
  }
  func.func @transform_1(%arg0: i32, %arg1: i32) -> (i32, i32, i32) {
    %c0_i32 = arith.constant 0 : i32
    %c0_i32_0 = arith.constant 0 : i32
    %c0_i32_1 = arith.constant 0 : i32
    return %arg1, %c0_i32, %c0_i32_0 : i32, i32, i32
  }
  func.func @transform_2(%arg0: i32, %arg1: i32) -> (i32, i32, i32) {
    %c0_i32 = arith.constant 0 : i32
    %c0_i32_0 = arith.constant 0 : i32
    %c0_i32_1 = arith.constant 0 : i32
    return %arg1, %c0_i32, %c0_i32_0 : i32, i32, i32
  }
  func.func @transform_3(%arg0: i32, %arg1: i32) -> (i32, i32, i32) {
    %c0_i32 = arith.constant 0 : i32
    %c0_i32_0 = arith.constant 0 : i32
    %c0_i32_1 = arith.constant 0 : i32
    return %arg1, %c0_i32, %c0_i32_0 : i32, i32, i32
  }
  func.func @transform_4(%arg0: i32, %arg1: i32) -> (i32, i32, i32) {
    %c0_i32 = arith.constant 0 : i32
    %c0_i32_0 = arith.constant 0 : i32
    %c0_i32_1 = arith.constant 0 : i32
    return %arg1, %c0_i32, %c0_i32_0 : i32, i32, i32
  }
  func.func @transform_5(%arg0: i32, %arg1: i32) -> (i32, i32, i32) {
    %c0_i32 = arith.constant 0 : i32
    %c0_i32_0 = arith.constant 0 : i32
    %c0_i32_1 = arith.constant 0 : i32
    return %arg1, %c0_i32, %c0_i32_0 : i32, i32, i32
  }
  func.func @transform_6(%arg0: i32, %arg1: i32) -> (i32, i32, i32) {
    %c0_i32 = arith.constant 0 : i32
    %c0_i32_0 = arith.constant 0 : i32
    %c0_i32_1 = arith.constant 0 : i32
    return %arg1, %c0_i32, %c0_i32_0 : i32, i32, i32
  }
  func.func @transform_7(%arg0: i32, %arg1: i32) -> (i32, i32, i32) {
    %c0_i32 = arith.constant 0 : i32
    %c0_i32_0 = arith.constant 0 : i32
    %c0_i32_1 = arith.constant 0 : i32
    return %arg1, %c0_i32, %c0_i32_0 : i32, i32, i32
  }
  func.func @transform_8(%arg0: i32, %arg1: i32) -> (i32, i32, i32) {
    %c0_i32 = arith.constant 0 : i32
    %c0_i32_0 = arith.constant 0 : i32
    %c0_i32_1 = arith.constant 0 : i32
    return %arg1, %c0_i32, %c0_i32_0 : i32, i32, i32
  }
  func.func @transform_9(%arg0: i32, %arg1: i32) -> (i32, i32, i32) {
    %c0_i32 = arith.constant 0 : i32
    %c0_i32_0 = arith.constant 0 : i32
    %c0_i32_1 = arith.constant 0 : i32
    return %arg1, %c0_i32, %c0_i32_0 : i32, i32, i32
  }
  func.func @transform_10(%arg0: i32, %arg1: i32) -> (i32, i32, i32) {
    %c0_i32 = arith.constant 0 : i32
    %c0_i32_0 = arith.constant 0 : i32
    %c0_i32_1 = arith.constant 0 : i32
    return %arg1, %c0_i32, %c0_i32_0 : i32, i32, i32
  }
  func.func @transform_11(%arg0: i32, %arg1: i32) -> (i32, i32, i32) {
    %c0_i32 = arith.constant 0 : i32
    %c0_i32_0 = arith.constant 0 : i32
    %c0_i32_1 = arith.constant 0 : i32
    return %arg1, %c0_i32, %c0_i32_0 : i32, i32, i32
  }
  func.func @transform_12(%arg0: i32, %arg1: i32) -> (i32, i32, i32) {
    %c0_i32 = arith.constant 0 : i32
    %c0_i32_0 = arith.constant 0 : i32
    %c0_i32_1 = arith.constant 0 : i32
    return %arg1, %c0_i32, %c0_i32_0 : i32, i32, i32
  }
  func.func @transform_13(%arg0: i32, %arg1: i32) -> (i32, i32, i32) {
    %c0_i32 = arith.constant 0 : i32
    %c0_i32_0 = arith.constant 0 : i32
    %c0_i32_1 = arith.constant 0 : i32
    return %arg0, %c0_i32, %c0_i32_0 : i32, i32, i32
  }
}

</mosaic_0001>

<bundles_post_ra>
// kernel: tpu_custom_call.1
= control target key start
LH: loop header
LB: loop body
LE: loop exit
PB: predicated region body
PF: predicated region fallthrough
CT: control target
= control target key end

     0   :  { %s3559_s0 = inlined_call_operand.hbm [shape: f32[2,8,32], index: 0, kind: input, shape index: {}]   ;;  %s3560_s1 = inlined_call_operand.vmem [shape: f32[2,32,96], index: 1, kind: input, shape index: {}]   ;;  %s3561_s2 = inlined_call_operand.vmem [shape: f32[2,1,96], index: 2, kind: input, shape index: {}]   ;;  %s3562_s3 = inlined_call_operand.vmem [shape: f32[2,32,32], index: 3, kind: input, shape index: {}]   ;;  %s3563_s4 = inlined_call_operand.vmem [shape: f32[2,1,32], index: 4, kind: input, shape index: {}]   ;;  %s3564_s5 = inlined_call_operand.vmem [shape: f32[2,32,64], index: 5, kind: input, shape index: {}]   ;;  %s3565_s6 = inlined_call_operand.vmem [shape: f32[2,1,64], index: 6, kind: input, shape index: {}]   ;;  %s3566_s7 = inlined_call_operand.vmem [shape: f32[2,64,32], index: 7, kind: input, shape index: {}]   ;;  %s3567_s8 = inlined_call_operand.vmem [shape: f32[2,1,32], index: 8, kind: input, shape index: {}]   ;;  %s3568_s9 = inlined_call_operand.vmem [shape: f32[2,1,32], index: 9, kind: input, shape index: {}]   ;;  %s3569_s10 = inlined_call_operand.vmem [shape: f32[2,1,32], index: 10, kind: input, shape index: {}]   ;;  %s3570_s11 = inlined_call_operand.vmem [shape: f32[2,1,32], index: 11, kind: input, shape index: {}]   ;;  %s3571_s12 = inlined_call_operand.vmem [shape: f32[2,1,32], index: 12, kind: input, shape index: {}]   ;;  %s3572_s13 = inlined_call_operand.hbm [shape: f32[2,8,32], index: 13, kind: output, shape index: {}]  }
   0x1   :  { %3576 = sst [smem:[#allocation12_spill]] %s3559_s0 }
   0x2   :  { %3577 = sst [smem:[#allocation13_spill]] %s3560_s1 }
   0x3   :  { %3578 = sst [smem:[#allocation14_spill]] %s3562_s3 }
   0x4   :  { %3579 = sst [smem:[#allocation15_spill]] %s3564_s5 }
   0x5   :  { %3580 = sst [smem:[#allocation16_spill]] %s3572_s13 }
   0x6   :  { %18 = vsyncpa [#allocation4], 0 }
   0x7   :  { %19 = vsyncpa [#allocation5], 0  ;;  %s3210_s25 = smov 0   ;;  %s3212_s26 = smov 0  }
   0x8   :  { %s3214_s27 = smov 0  }
   0x9 LB: > { %3581 = sst [smem:[#allocation9_spill]] %s3113_s26  ;;  %s3573_s28 = sadd.s32 4294967295, %s3117_s27   ;;  %s3117_s27 = sphi %s3214_s27, %s25_s27   ;;  %s3113_s26 = sphi %s3212_s26, %s3599_s26   ;;  %s3109_s25 = sphi %s3210_s25, %s3598_s25  }
   0xa   : > { %3582 = sst [smem:[#allocation10_spill]] %s3117_s27  ;;  %s34_s29 = sadd.s32 1, %s3113_s26 }
   0xb   : > { %p35_p0 = scmp.ge.s32.totalorder %s34_s29, 2  ;;  %p2677_p1 = scmp.ge.s32.totalorder %s3117_s27, 1 }
   0xc   : > { %p406_p2 = scmp.lt.s32.totalorder %s3117_s27, 3  ;;  %p3237_p4 = scmp.eq.s32.totalorder %s3573_s28, 0 }
   0xd   : > { %s3601_s29 = smov (%p35_p0, %s34_s29), 0  ;;  %s3119_s15 = smov [#allocation3]  }
   0xe   : > { %3583 = sst [smem:[#allocation11_spill]] %s3601_s29  ;;  %p3231_p3 = pnand %p2677_p1, %p406_p2 }
   0xf   : > { %s421_s16 = sshll.u32 %s3119_s15, 4  ;;  %s422_s16 = int_to_ptr.vmem [resolvable:$true] %s421_s16 }
  0x10   : > { %p2940_p5 = pneg %p3231_p3  ;;  %s3048_s17 = scalar_lea.vmem %s422_s16, 256 }
  0x11   : > { %p3049_p8 = scmp.ne.s32.totalorder %s422_s16, %s3048_s17  ;;  %p3056_p11 = scmp.lt.s32.totalorder %s422_s16, %s422_s16 }
  0x12   : > { %p2941_p6 = pnand %p3237_p4, %p2940_p5  ;;  %p3057_p12 = scmp.lt.s32.totalorder %s3048_s17, %s3048_s17 }
  0x14   : > { %p3039_p7 = pneg %p2941_p6  ;;  %p3058_p13 = por %p3057_p12, %p3056_p11 }
  0x16   : > { %p3051_p9 = pnand %p3049_p8, %p3039_p7 }
  0x18   : > { %p3052_p10 = pneg %p3051_p9 }
  0x1a   : > { %p3059_p0 = pnand %p3058_p13, %p3052_p10 }
  0x1c   : > { %3062 = shalt.err (!%p3059_p0)
}
  0x1d   : > { %s3120_s18 = smov 128   ;;  %s3121_s19 = smov 8  }
  0x1e   : > { %s3586_s0 = sld [smem:[#allocation12_spill]] }
  0x20   : > { %517 = sbr.rel (%p3231_p3) target bundleno = 3985 (0xf91), region = 72 }
  0x24   : > { %2943 = dma.hbm_to_vmem [thread:$0]  (!%p2941_p6), %s3586_s0, 256, %s422_s16, [#allocation4], %s3120_s18, %s3120_s18, %s3121_s19  }
  0x25   : > { %3100 = dma.done.wait (%p3237_p4), [#allocation4], 256  }
  0x26   : > { %3102 = vsyncadd (%p3237_p4), [#allocation4], 4294967040  ;;  %p596_p1 = scmp.lt.s32.totalorder %s3109_s25, 1  ;;  %s3587_s1 = sld [smem:[#allocation13_spill]] }
  0x27   : > { %s3588_s3 = sld [smem:[#allocation14_spill]]  ;;  %p2690_p2 = scmp.ne.s32.totalorder %s3109_s25, 0 }
  0x28   : > { %s3256_s22 = scalar_select %p596_p1, %s3109_s25, 1 }
  0x29   : > { %s3589_s5 = sld [smem:[#allocation15_spill]] }
  0x2a   : > { %s2736_s23 = sshll.u32 %s3256_s22, 5  ;;  %s2739_s15 = sshll.u32 %s3256_s22, 6 }
  0x2b   : > { %s3288_s18 = scalar_lea.vmem %s3566_s7, %s2739_s15  ;;  %s627_s28 = scalar_lea.vmem %s3567_s8, %s3256_s22 }
  0x2c   : > { %s600_s17 = scalar_lea.vmem %s3587_s1, %s2736_s23  ;;  %s630_s26 = scalar_lea.vmem %s3568_s9, %s3256_s22 }
  0x2d   : > { %s3269_s20 = scalar_lea.vmem %s3588_s3, %s2736_s23  ;;  %s636_s14 = scalar_lea.vmem %s3570_s11, %s3256_s22 }
  0x2e   : > { %s639_s15 = scalar_lea.vmem %s3571_s12, %s3256_s22  ;;  %644 = sbr.rel (%p2690_p2) target bundleno = 53 (0x35), region = 80 }
  0x2f   : > { %s3278_s13 = scalar_lea.vmem %s3589_s5, %s2736_s23  ;;  %s633_s5 = scalar_lea.vmem %s3569_s10, %s3256_s22 }
  0x33   : > { %v645_v0 = vld [vmem:[#allocation3] sm:$0xff]  ;;  %vm647_vm0 = vcmask 261120   ;;  %v646_v1 = vld [vmem:[#allocation3 + $0x8] sm:$0xff] }
  0x34   : > { %648 = vst.msk [vmem:[#allocation2] sm:$0xff] %vm647_vm0, %v645_v0  ;;  %649 = vst.msk [vmem:[#allocation2 + $0x8] sm:$0xff] %vm647_vm0, %v646_v1 }
  0x35 PF: > { %v655_v2 = vld [vmem:[%s600_s17 + $0x18] sm:$0xff]  ;;  %v654_v3 = vld [vmem:[%s600_s17 + $0x10] sm:$0xff]  ;;  %vm663_vm1 = vcmask 261120   ;;  %v653_v5 = vld [vmem:[%s600_s17 + $0x8] sm:$0xff]  ;;  %v3122_v8 = vmov 0.0   ;;  %vm3123_vm2 = vmmov 0   ;;  %s3590_s27 = scalar_lea.vmem %s3561_s2, %s3256_s22 }
  0x36   : > { %2800 = vmatprep.subr.mxu1 %v655_v2  ;;  %v652_v6 = vld [vmem:[%s600_s17] sm:$0xff]  ;;  %2821 = vmatprep.subr.mxu0 %v3122_v8  ;;  %s3124_s17 = smov 96   ;;  %vm750_vm3 = vcmask 64512   ;;  %s3125_s16 = smov 64   ;;  %vm2097_vm4 = vcmask 195584   ;;  %vm2094_vm5 = vcmask 130048  }
  0x37   : > { %2801 = vmatpush3.msra.mxu1 %v655_v2  ;;  %2823 = vmatprep.mubr.msk.f32.mxu0 %vm3123_vm2, %v3122_v8  ;;  %v2691_v10 = vld [vmem:[%s3590_s27] ss:$0 sm:$0xff]  ;;  %s3126_s19 = smov 88   ;;  %s3127_s21 = smov 120   ;;  %vm2356_vm6 = vcmask 523264  }
  0x38   : > { %2802 = vmatprep.subr.mxu1 %v654_v3  ;;  %s3128_s29 = smov 56   ;;  %s3129_s23 = smov 80  }
  0x39   : > { %2803 = vmatpush3.msra.mxu1 %v654_v3  ;;  %s3130_s24 = smov 112   ;;  %s3131_s30 = smov 48  }
  0x3a   : > { %2804 = vmatprep.subr.mxu1 %v653_v5  ;;  %s3132_s1 = smov 72   ;;  %s3133_s0 = smov 104  }
  0x3b   : > { %v3311_v4 = vld [vmem:[#allocation2] sm:$0xff]  ;;  %2805 = vmatpush3.msra.mxu1 %v653_v5  ;;  %v3315_v7 = vld [vmem:[#allocation2 + $0x8] sm:$0xff]  ;;  %s3134_s3 = smov 40   ;;  %s3135_s27 = smov 8  }
  0x3c   : > { %2808 = vmatprep.mubr.msk.f32.mxu1 %vm663_vm1, %v3311_v4  ;;  %2806 = vmatprep.subr.mxu1 %v652_v6  ;;  %p2731_p3 = scmp.ne.s32.totalorder %s3109_s25, 1 }
  0x3d   : > { %2807 = vmatpush3.msra.mxu1 %v652_v6 }
  0x3e   : > { %2809 = vmatmul.mubr.msk.f32.vlgmr.msra.gmra.mxu1 %vm663_vm1, %v3315_v7  ;;  %2811 = vmatprep.subr.mxu1 %v3122_v8 }
  0x3f   : > { %2813 = vmatprep.mubr.msk.f32.mxu1 %vm3123_vm2, %v3122_v8 }
  0xfe   : > { %v2810_v9 = vpop.f32.mrf.mxu1 }
  0xff   : > { %v3333_v13 = vadd.f32 %v2810_v9, %v2691_v10 }
 0x100   : > { %v736_v11 = vpop.f32.mrf.mxu1 }
 0x101   : > { %v3330_v12 = vadd.f32 %v2691_v10, %v736_v11  ;;  %v3347_v17 = vmul.f32 0.35355338, %v3333_v13 }
 0x103   : > { %748 = vrot.lane.b32.xlu0 %v3330_v12, %s3124_s17  ;;  %v3339_v15 = vmul.f32 0.35355338, %v3330_v12 }
 0x107   : > { %827 = vrot.lane.b32.xlu0 %v3333_v13, %s3124_s17  ;;  %s3136_s17 = smov 16  }
 0x175   : > { %v749_v14 = vpop.permute.xlu0 %748 }
 0x176   : > { %2812 = vmatpush3.xpose.msk.msra.mxu1 %vm750_vm3, %v749_v14 }
 0x177   : > { %2816 = vmatprep.subr.mxu1 %v3122_v8 }
 0x179   : > { %v828_v16 = vpop.permute.xlu0 %827  ;;  %2814 = vmatmul.mubr.msk.f32.vlgmr.msra.gmra.mxu1 %vm750_vm3, %v3339_v15 }
 0x17a   : > { %2817 = vmatpush3.xpose.msk.msra.mxu1 %vm750_vm3, %v828_v16  ;;  %2818 = vmatprep.mubr.msk.f32.mxu1 %vm3123_vm2, %v3122_v8 }
 0x17b   : > { %2826 = vmatprep.subr.mxu1 %v3122_v8 }
 0x17d   : > { %2819 = vmatmul.mubr.msk.f32.vlgmr.msra.gmra.mxu1 %vm750_vm3, %v3347_v17 }
 0x17e   : > { %2828 = vmatprep.mubr.msk.f32.mxu1 %vm3123_vm2, %v3122_v8 }
 0x239   : > { %v822_v18 = vpop.f32.mrf.mxu1 }
 0x23a   : > { %v904_v19 = vsel %vm750_vm3, %v822_v18, -inf }
 0x23b   : > { %905 = vmax.xlane.f32.xlu1 %v904_v19  ;;  %v2815_v20 = vpop.f32.mrf.mxu1 }
 0x23d   : > { %v900_v21 = vpop.f32.mrf.mxu1 }
 0x23e   : > { %v907_v22 = vsel %vm750_vm3, %v900_v21, -inf }
 0x23f   : > { %908 = vmax.xlane.f32.xlu1 %v907_v22  ;;  %v2820_v23 = vpop.f32.mrf.mxu1 }
 0x250   : > { %926 = vrot.lane.b32.xlu1 %v3330_v12, %s3125_s16 }
 0x254   : > { %1002 = vrot.lane.b32.xlu1 %v3333_v13, %s3125_s16  ;;  %s3137_s16 = smov 24  }
 0x258   : > { %1080 = vrot.lane.b32.xlu1 %v3330_v12, %s3126_s19 }
 0x25c   : > { %1158 = vrot.lane.b32.xlu1 %v3333_v13, %s3126_s19 }
 0x2c4   : > { %v906_v24 = vpop.xlane.xlu1 %905 }
 0x2c5   : > { %v910_v25 = vsub.f32 %v822_v18, %v906_v24 }
 0x2c7   : > { %v912_v26 = vmul.f32 1.442695, %v910_v25 }
 0x2c8   : > { %v909_v27 = vpop.xlane.xlu1 %908 }
 0x2c9   : > { %2993 = vpow2.f32 %v912_v26  ;;  %v911_v28 = vsub.f32 %v900_v21, %v909_v27 }
 0x2cb   : > { %v914_v29 = vmul.f32 1.442695, %v911_v28 }
 0x2cc   : > { %v927_v30 = vpop.permute.xlu1 %926 }
 0x2cd   : > { %2995 = vpow2.f32 %v914_v29  ;;  %2822 = vmatpush3.msra.mxu0 %v927_v30 }
 0x2ce   : > { %2831 = vmatprep.subr.mxu0 %v3122_v8 }
 0x2d0   : > { %v1003_v31 = vpop.permute.xlu1 %1002 }
 0x2d1   : > { %2827 = vmatpush3.msra.mxu1 %v1003_v31 }
 0x2d2   : > { %2836 = vmatprep.subr.mxu1 %v3122_v8 }
 0x2d4   : > { %v1081_v36 = vpop.permute.xlu1 %1080 }
 0x2d6   : > { %v2994_v32 = vpop.eup %2993 }
 0x2d7   : > { %v916_v33 = vsel %vm750_vm3, %v2994_v32, 0.0 }
 0x2d8   : > { %917 = vadd.xlane.f32.xlu0 %v916_v33  ;;  %v1159_v37 = vpop.permute.xlu1 %1158 }
 0x2da   : > { %v2996_v34 = vpop.eup %2995 }
 0x2db   : > { %v919_v35 = vsel %vm750_vm3, %v2996_v34, 0.0 }
 0x2dc   : > { %920 = vadd.xlane.f32.xlu1 %v919_v35 }
 0x2ed   : > { %1156 = vrot.lane.b32.xlu1 %v3347_v17, %s3127_s21 }
 0x2ee   : > { %1078 = vrot.lane.b32.xlu0 %v3339_v15, %s3127_s21  ;;  %s3591_s21 = scalar_lea.vmem %s3563_s4, %s3256_s22 }
 0x361   : > { %v918_v38 = vpop.xlane.xlu0 %917 }
 0x362   : > { %2997 = vrcp.f32 %v918_v38 }
 0x365   : > { %v921_v39 = vpop.xlane.xlu1 %920  ;;  %v1079_v44 = vpop.permute.xlu0 %1078 }
 0x366   : > { %2999 = vrcp.f32 %v921_v39 }
 0x369   : > { %v1157_v45 = vpop.permute.xlu1 %1156 }
 0x36f   : > { %v2998_v40 = vpop.eup %2997 }
 0x370   : > { %v924_v41 = vmul.f32 %v2998_v40, %v2994_v32 }
 0x372   : > { %2824 = vmatmul.mubr.msk.f32.vlgmr.msra.gmra.mxu0 %vm750_vm3, %v924_v41 }
 0x373   : > { %v3000_v42 = vpop.eup %2999  ;;  %2832 = vmatpush3.xpose.msk.msra.mxu0 %vm750_vm3, %v1081_v36  ;;  %2833 = vmatprep.mubr.msk.f32.mxu0 %vm3123_vm2, %v3122_v8 }
 0x374   : > { %v925_v43 = vmul.f32 %v3000_v42, %v2996_v34  ;;  %2841 = vmatprep.subr.mxu0 %v3122_v8 }
 0x376   : > { %2829 = vmatmul.mubr.msk.f32.vlgmr.msra.gmra.mxu1 %vm750_vm3, %v925_v43  ;;  %2834 = vmatmul.mubr.msk.f32.vlgmr.msra.gmra.mxu0 %vm750_vm3, %v1079_v44 }
 0x377   : > { %2837 = vmatpush3.xpose.msk.msra.mxu1 %vm750_vm3, %v1159_v37  ;;  %2838 = vmatprep.mubr.msk.f32.mxu1 %vm3123_vm2, %v3122_v8 }
 0x378   : > { %2846 = vmatprep.subr.mxu1 %v3122_v8  ;;  %2843 = vmatprep.mubr.msk.f32.mxu0 %vm3123_vm2, %v3122_v8 }
 0x37a   : > { %2839 = vmatmul.mubr.msk.f32.vlgmr.msra.gmra.mxu1 %vm750_vm3, %v1157_v45 }
 0x37b   : > { %2848 = vmatprep.mubr.msk.f32.mxu1 %vm3123_vm2, %v3122_v8 }
 0x432   : > { %v3382_v46 = vpop.f32.mrf.mxu0 }
 0x434   : > { %v2825_v47 = vpop.f32.mrf.mxu0 }
 0x436   : > { %v3384_v48 = vpop.f32.mrf.mxu1  ;;  %v1152_v49 = vpop.f32.mrf.mxu0 }
 0x437   : > { %v1234_v50 = vsel %vm750_vm3, %v1152_v49, -inf }
 0x438   : > { %1235 = vmax.xlane.f32.xlu1 %v1234_v50  ;;  %v2830_v51 = vpop.f32.mrf.mxu1  ;;  %v2835_v52 = vpop.f32.mrf.mxu0 }
 0x43a   : > { %v1230_v53 = vpop.f32.mrf.mxu1 }
 0x43b   : > { %v1237_v54 = vsel %vm750_vm3, %v1230_v53, -inf }
 0x43c   : > { %1238 = vmax.xlane.f32.xlu0 %v1237_v54  ;;  %v2840_v55 = vpop.f32.mrf.mxu1 }
 0x449   : > { %1256 = vrot.lane.b32.xlu1 %v3330_v12, %s3128_s29 }
 0x44d   : > { %1410 = vrot.lane.b32.xlu1 %v3330_v12, %s3129_s23 }
 0x451   : > { %1488 = vrot.lane.b32.xlu1 %v3333_v13, %s3129_s23 }
 0x452   : > { %1332 = vrot.lane.b32.xlu0 %v3333_v13, %s3128_s29 }
 0x456   : > { %1408 = vrot.lane.b32.xlu0 %v3339_v15, %s3130_s24 }
 0x4c1   : > { %v1236_v56 = vpop.xlane.xlu1 %1235 }
 0x4c2   : > { %v1240_v57 = vsub.f32 %v1152_v49, %v1236_v56 }
 0x4c4   : > { %v1242_v58 = vmul.f32 1.442695, %v1240_v57 }
 0x4c5   : > { %v1257_v59 = vpop.permute.xlu1 %1256  ;;  %v1239_v60 = vpop.xlane.xlu0 %1238 }
 0x4c6   : > { %3001 = vpow2.f32 %v1242_v58  ;;  %v1241_v61 = vsub.f32 %v1230_v53, %v1239_v60  ;;  %2842 = vmatpush3.msra.mxu0 %v1257_v59 }
 0x4c7   : > { %2851 = vmatprep.subr.mxu0 %v3122_v8 }
 0x4c8   : > { %v1244_v62 = vmul.f32 1.442695, %v1241_v61 }
 0x4c9   : > { %v1333_v63 = vpop.permute.xlu0 %1332  ;;  %v1411_v5 = vpop.permute.xlu1 %1410 }
 0x4ca   : > { %3003 = vpow2.f32 %v1244_v62  ;;  %2847 = vmatpush3.msra.mxu1 %v1333_v63 }
 0x4cb   : > { %2856 = vmatprep.subr.mxu1 %v3122_v8 }
 0x4cd   : > { %v1489_v6 = vpop.permute.xlu1 %1488  ;;  %v1409_v19 = vpop.permute.xlu0 %1408 }
 0x4d3   : > { %v3002_v0 = vpop.eup %3001 }
 0x4d4   : > { %v1246_v1 = vsel %vm750_vm3, %v3002_v0, 0.0 }
 0x4d5   : > { %1247 = vadd.xlane.f32.xlu1 %v1246_v1 }
 0x4d7   : > { %v3004_v2 = vpop.eup %3003 }
 0x4d8   : > { %v1249_v3 = vsel %vm750_vm3, %v3004_v2, 0.0 }
 0x4d9   : > { %1250 = vadd.xlane.f32.xlu1 %v1249_v3 }
 0x4ea   : > { %1486 = vrot.lane.b32.xlu1 %v3347_v17, %s3130_s24 }
 0x55e   : > { %v1248_v9 = vpop.xlane.xlu1 %1247 }
 0x55f   : > { %3005 = vrcp.f32 %v1248_v9 }
 0x562   : > { %v1251_v10 = vpop.xlane.xlu1 %1250 }
 0x563   : > { %3007 = vrcp.f32 %v1251_v10 }
 0x566   : > { %v1487_v20 = vpop.permute.xlu1 %1486 }
 0x56c   : > { %v3006_v11 = vpop.eup %3005 }
 0x56d   : > { %v1254_v14 = vmul.f32 %v3006_v11, %v3002_v0 }
 0x56f   : > { %2844 = vmatmul.mubr.msk.f32.vlgmr.msra.gmra.mxu0 %vm750_vm3, %v1254_v14 }
 0x570   : > { %v3008_v16 = vpop.eup %3007  ;;  %2852 = vmatpush3.xpose.msk.msra.mxu0 %vm750_vm3, %v1411_v5  ;;  %2853 = vmatprep.mubr.msk.f32.mxu0 %vm3123_vm2, %v3122_v8 }
 0x571   : > { %v1255_v18 = vmul.f32 %v3008_v16, %v3004_v2  ;;  %2861 = vmatprep.subr.mxu0 %v3122_v8 }
 0x573   : > { %2849 = vmatmul.mubr.msk.f32.vlgmr.msra.gmra.mxu1 %vm750_vm3, %v1255_v18  ;;  %2854 = vmatmul.mubr.msk.f32.vlgmr.msra.gmra.mxu0 %vm750_vm3, %v1409_v19 }
 0x574   : > { %2857 = vmatpush3.xpose.msk.msra.mxu1 %vm750_vm3, %v1489_v6  ;;  %2858 = vmatprep.mubr.msk.f32.mxu1 %vm3123_vm2, %v3122_v8 }
 0x575   : > { %2866 = vmatprep.subr.mxu1 %v3122_v8  ;;  %2863 = vmatprep.mubr.msk.f32.mxu0 %vm3123_vm2, %v3122_v8 }
 0x577   : > { %2859 = vmatmul.mubr.msk.f32.vlgmr.msra.gmra.mxu1 %vm750_vm3, %v1487_v20 }
 0x578   : > { %2868 = vmatprep.mubr.msk.f32.mxu1 %vm3123_vm2, %v3122_v8 }
 0x62f   : > { %v3414_v21 = vpop.f32.mrf.mxu0 }
 0x631   : > { %v2845_v22 = vpop.f32.mrf.mxu0 }
 0x632   : > { %v2103_v22 = vld [vmem:[%s3269_s20 + $0x18] sm:$0xff] }
 0x633   : > { %v3416_v23 = vpop.f32.mrf.mxu1  ;;  %v1482_v24 = vpop.f32.mrf.mxu0 }
 0x634   : > { %v1564_v25 = vsel %vm750_vm3, %v1482_v24, -inf }
 0x635   : > { %1565 = vmax.xlane.f32.xlu0 %v1564_v25  ;;  %v2850_v26 = vpop.f32.mrf.mxu1  ;;  %v2855_v27 = vpop.f32.mrf.mxu0 }
 0x637   : > { %v1560_v28 = vpop.f32.mrf.mxu1 }
 0x638   : > { %v1567_v29 = vsel %vm750_vm3, %v1560_v28, -inf }
 0x639   : > { %1568 = vmax.xlane.f32.xlu1 %v1567_v29  ;;  %v2860_v30 = vpop.f32.mrf.mxu1 }
 0x64a   : > { %1586 = vrot.lane.b32.xlu1 %v3330_v12, %s3131_s30 }
 0x64b   : > { %1662 = vrot.lane.b32.xlu0 %v3333_v13, %s3131_s30  ;;  %s3592_s30 = scalar_lea.vmem %s3565_s6, %s3256_s22 }
 0x64e   : > { %1740 = vrot.lane.b32.xlu1 %v3330_v12, %s3132_s1 }
 0x652   : > { %1818 = vrot.lane.b32.xlu1 %v3333_v13, %s3132_s1 }
 0x656   : > { %1816 = vrot.lane.b32.xlu1 %v3347_v17, %s3133_s0 }
 0x6be   : > { %v1566_v31 = vpop.xlane.xlu0 %1565 }
 0x6bf   : > { %v1570_v32 = vsub.f32 %v1482_v24, %v1566_v31  ;;  %v2100_v24 = vld [vmem:[%s3269_s20] sm:$0xff] }
 0x6c1   : > { %v1572_v33 = vmul.f32 1.442695, %v1570_v32 }
 0x6c2   : > { %v1663_v34 = vpop.permute.xlu0 %1662  ;;  %v1569_v35 = vpop.xlane.xlu1 %1568 }
 0x6c3   : > { %3009 = vpow2.f32 %v1572_v33  ;;  %v1571_v36 = vsub.f32 %v1560_v28, %v1569_v35  ;;  %2867 = vmatpush3.msra.mxu1 %v1663_v34 }
 0x6c4   : > { %2876 = vmatprep.subr.mxu1 %v3122_v8 }
 0x6c5   : > { %v1574_v37 = vmul.f32 1.442695, %v1571_v36 }
 0x6c6   : > { %v1587_v38 = vpop.permute.xlu1 %1586 }
 0x6c7   : > { %3011 = vpow2.f32 %v1574_v37  ;;  %2862 = vmatpush3.msra.mxu0 %v1587_v38 }
 0x6c8   : > { %2871 = vmatprep.subr.mxu0 %v3122_v8 }
 0x6ca   : > { %v1741_v44 = vpop.permute.xlu1 %1740 }
 0x6ce   : > { %v1819_v50 = vpop.permute.xlu1 %1818 }
 0x6d0   : > { %v3010_v39 = vpop.eup %3009 }
 0x6d1   : > { %v1576_v40 = vsel %vm750_vm3, %v3010_v39, 0.0 }
 0x6d2   : > { %1577 = vadd.xlane.f32.xlu0 %v1576_v40  ;;  %v1817_v52 = vpop.permute.xlu1 %1816 }
 0x6d4   : > { %v3012_v17 = vpop.eup %3011 }
 0x6d5   : > { %v1579_v41 = vsel %vm750_vm3, %v3012_v17, 0.0 }
 0x6d6   : > { %1580 = vadd.xlane.f32.xlu0 %v1579_v41 }
 0x6ec   : > { %1738 = vrot.lane.b32.xlu0 %v3339_v15, %s3133_s0 }
 0x75b   : > { %v1578_v42 = vpop.xlane.xlu0 %1577 }
 0x75c   : > { %3013 = vrcp.f32 %v1578_v42 }
 0x75f   : > { %v1581_v43 = vpop.xlane.xlu0 %1580 }
 0x760   : > { %3015 = vrcp.f32 %v1581_v43 }
 0x763   : > { %v1739_v15 = vpop.permute.xlu0 %1738 }
 0x769   : > { %v3014_v45 = vpop.eup %3013 }
 0x76a   : > { %v1584_v47 = vmul.f32 %v3014_v45, %v3010_v39 }
 0x76c   : > { %2864 = vmatmul.mubr.msk.f32.vlgmr.msra.gmra.mxu0 %vm750_vm3, %v1584_v47 }
 0x76d   : > { %v3016_v49 = vpop.eup %3015  ;;  %2872 = vmatpush3.xpose.msk.msra.mxu0 %vm750_vm3, %v1741_v44  ;;  %2873 = vmatprep.mubr.msk.f32.mxu0 %vm3123_vm2, %v3122_v8 }
 0x76e   : > { %v1585_v51 = vmul.f32 %v3016_v49, %v3012_v17  ;;  %2881 = vmatprep.subr.mxu0 %v3122_v8 }
 0x770   : > { %2869 = vmatmul.mubr.msk.f32.vlgmr.msra.gmra.mxu1 %vm750_vm3, %v1585_v51  ;;  %2874 = vmatmul.mubr.msk.f32.vlgmr.msra.gmra.mxu0 %vm750_vm3, %v1739_v15 }
 0x771   : > { %2877 = vmatpush3.xpose.msk.msra.mxu1 %vm750_vm3, %v1819_v50  ;;  %2878 = vmatprep.mubr.msk.f32.mxu1 %vm3123_vm2, %v3122_v8 }
 0x772   : > { %2886 = vmatprep.subr.mxu1 %v3122_v8  ;;  %2883 = vmatprep.mubr.msk.f32.mxu0 %vm3123_vm2, %v3122_v8 }
 0x774   : > { %2879 = vmatmul.mubr.msk.f32.vlgmr.msra.gmra.mxu1 %vm750_vm3, %v1817_v52 }
 0x775   : > { %2888 = vmatprep.mubr.msk.f32.mxu1 %vm3123_vm2, %v3122_v8 }
 0x82c   : > { %v1658_v53 = vpop.f32.mrf.mxu0 }
 0x82e   : > { %v2865_v54 = vpop.f32.mrf.mxu0 }
 0x830   : > { %v1734_v55 = vpop.f32.mrf.mxu1  ;;  %v1812_v56 = vpop.f32.mrf.mxu0 }
 0x831   : > { %v1894_v57 = vsel %vm750_vm3, %v1812_v56, -inf }
 0x832   : > { %1895 = vmax.xlane.f32.xlu0 %v1894_v57  ;;  %v2870_v58 = vpop.f32.mrf.mxu1  ;;  %v2875_v59 = vpop.f32.mrf.mxu0  ;;  %v2241_v57 = vld [vmem:[%s3278_s13 + $0x10] sm:$0xff] }
 0x833   : > { %v2240_v58 = vld [vmem:[%s3278_s13 + $0x8] sm:$0xff]  ;;  %v2239_v59 = vld [vmem:[%s3278_s13] sm:$0xff] }
 0x834   : > { %v1890_v60 = vpop.f32.mrf.mxu1 }
 0x835   : > { %v1897_v61 = vsel %vm750_vm3, %v1890_v60, -inf }
 0x836   : > { %1898 = vmax.xlane.f32.xlu1 %v1897_v61  ;;  %v2880_v62 = vpop.f32.mrf.mxu1 }
 0x847   : > { %1916 = vrot.lane.b32.xlu1 %v3330_v12, %s3134_s3 }
 0x84b   : > { %2070 = vrot.lane.b32.xlu1 %v3414_v21, %s3135_s27 }
 0x84f   : > { %2072 = vrot.lane.b32.xlu1 %v3416_v23, %s3135_s27  ;;  %v2102_v23 = vld [vmem:[%s3269_s20 + $0x10] sm:$0xff] }
 0x853   : > { %2080 = vrot.lane.b32.xlu1 %v1734_v55, %s3136_s17 }
 0x8bb   : > { %v1896_v8 = vpop.xlane.xlu0 %1895 }
 0x8bc   : > { %v1900_v63 = vsub.f32 %v1812_v56, %v1896_v8  ;;  %v2242_v56 = vld [vmem:[%s3278_s13 + $0x18] sm:$0xff] }
 0x8be   : > { %v1902_v0 = vmul.f32 1.442695, %v1900_v63 }
 0x8bf   : > { %v1899_v1 = vpop.xlane.xlu1 %1898 }
 0x8c0   : > { %3017 = vpow2.f32 %v1902_v0  ;;  %v1901_v2 = vsub.f32 %v1890_v60, %v1899_v1 }
 0x8c2   : > { %v1904_v3 = vmul.f32 1.442695, %v1901_v2  ;;  %v2721_v2 = vld [vmem:[%s630_s26] ss:$0 sm:$0xff] }
 0x8c3   : > { %v1917_v5 = vpop.permute.xlu1 %1916 }
 0x8c4   : > { %3019 = vpow2.f32 %v1904_v3  ;;  %2882 = vmatpush3.msra.mxu0 %v1917_v5  ;;  %v2722_v5 = vld [vmem:[%s633_s5] ss:$0 sm:$0xff] }
 0x8c5   : > { %2891 = vmatprep.subr.mxu0 %v2103_v22 }
 0x8c7   : > { %v2071_v29 = vpop.permute.xlu1 %2070 }
 0x8c8   : > { %v2092_v32 = vsel %vm750_vm3, %v3382_v46, %v2071_v29  ;;  %v2718_v46 = vld [vmem:[%s3591_s21] ss:$0 sm:$0xff] }
 0x8cb   : > { %v2073_v30 = vpop.permute.xlu1 %2072 }
 0x8cc   : > { %v2093_v37 = vsel %vm750_vm3, %v3384_v48, %v2073_v30 }
 0x8cd   : > { %v3018_v12 = vpop.eup %3017 }
 0x8ce   : > { %v1906_v6 = vsel %vm750_vm3, %v3018_v12, 0.0 }
 0x8cf   : > { %1907 = vadd.xlane.f32.xlu0 %v1906_v6  ;;  %v2081_v33 = vpop.permute.xlu1 %2080 }
 0x8d0   : > { %v2096_v38 = vsel %vm2094_vm5, %v2093_v37, %v2081_v33 }
 0x8d1   : > { %v3020_v9 = vpop.eup %3019 }
 0x8d2   : > { %v1909_v10 = vsel %vm750_vm3, %v3020_v9, 0.0 }
 0x8d3   : > { %1910 = vadd.xlane.f32.xlu0 %v1909_v10 }
 0x8e9   : > { %1992 = vrot.lane.b32.xlu0 %v3333_v13, %s3134_s3  ;;  %v2101_v13 = vld [vmem:[%s3269_s20 + $0x8] sm:$0xff] }
 0x8ed   : > { %2078 = vrot.lane.b32.xlu0 %v1658_v53, %s3136_s17 }
 0x958   : > { %v1908_v11 = vpop.xlane.xlu0 %1907 }
 0x959   : > { %3021 = vrcp.f32 %v1908_v11 }
 0x95c   : > { %v1911_v14 = vpop.xlane.xlu0 %1910 }
 0x95d   : > { %3023 = vrcp.f32 %v1911_v14 }
 0x960   : > { %v1993_v16 = vpop.permute.xlu0 %1992 }
 0x961   : > { %2887 = vmatpush3.msra.mxu1 %v1993_v16  ;;  %v2348_v16 = vld [vmem:[%s3288_s18 + $0x38] sm:$0xff] }
 0x962   : > { %2902 = vmatprep.subr.mxu1 %v2242_v56 }
 0x964   : > { %v2079_v31 = vpop.permute.xlu0 %2078 }
 0x965   : > { %v2095_v34 = vsel %vm2094_vm5, %v2092_v32, %v2079_v31 }
 0x966   : > { %v3022_v18 = vpop.eup %3021 }
 0x967   : > { %v1914_v19 = vmul.f32 %v3022_v18, %v3018_v12  ;;  %v2347_v18 = vld [vmem:[%s3288_s18 + $0x30] sm:$0xff] }
 0x969   : > { %2884 = vmatmul.mubr.msk.f32.vlgmr.msra.gmra.mxu0 %vm750_vm3, %v1914_v19  ;;  %v2346_v19 = vld [vmem:[%s3288_s18 + $0x28] sm:$0xff] }
 0x96a   : > { %v3024_v20 = vpop.eup %3023  ;;  %2892 = vmatpush3.msra.mxu0 %v2103_v22  ;;  %v2343_v22 = vld [vmem:[%s3288_s18 + $0x10] sm:$0xff] }
 0x96b   : > { %v1915_v21 = vmul.f32 %v3024_v20, %v3020_v9  ;;  %2893 = vmatprep.subr.mxu0 %v2102_v23  ;;  %v2345_v20 = vld [vmem:[%s3288_s18 + $0x20] sm:$0xff] }
 0x96c   : > { %2894 = vmatpush3.msra.mxu0 %v2102_v23  ;;  %v2342_v23 = vld [vmem:[%s3288_s18 + $0x8] sm:$0xff] }
 0x96d   : > { %2889 = vmatmul.mubr.msk.f32.vlgmr.msra.gmra.mxu1 %vm750_vm3, %v1915_v21  ;;  %2895 = vmatprep.subr.mxu0 %v2101_v13  ;;  %v2344_v21 = vld [vmem:[%s3288_s18 + $0x18] sm:$0xff] }
 0x96e   : > { %2896 = vmatpush3.msra.mxu0 %v2101_v13  ;;  %2903 = vmatpush3.msra.mxu1 %v2242_v56  ;;  %v2341_v13 = vld [vmem:[%s3288_s18] sm:$0xff] }
 0x96f   : > { %2897 = vmatprep.subr.mxu0 %v2100_v24  ;;  %2904 = vmatprep.subr.mxu1 %v2241_v57 }
 0x970   : > { %2898 = vmatpush3.msra.mxu0 %v2100_v24  ;;  %2905 = vmatpush3.msra.mxu1 %v2241_v57  ;;  %v2723_v24 = vld [vmem:[%s3592_s30] ss:$0 sm:$0xff] }
 0x971   : > { %2906 = vmatprep.subr.mxu1 %v2240_v58  ;;  %2913 = vmatprep.subr.mxu0 %v2348_v16 }
 0x972   : > { %2907 = vmatpush3.msra.mxu1 %v2240_v58 }
 0x973   : > { %2908 = vmatprep.subr.mxu1 %v2239_v59 }
 0x974   : > { %2909 = vmatpush3.msra.mxu1 %v2239_v59 }
 0xa29   : > { %v1988_v25 = vpop.f32.mrf.mxu0 }
 0xa2a   : > { %2086 = vrot.lane.b32.xlu0 %v1988_v25, %s3137_s16 }
 0xa2b   : > { %v2885_v26 = vpop.f32.mrf.mxu0 }
 0xa2d   : > { %v2064_v27 = vpop.f32.mrf.mxu1 }
 0xa2e   : > { %2088 = vrot.lane.b32.xlu1 %v2064_v27, %s3137_s16 }
 0xa2f   : > { %v2890_v28 = vpop.f32.mrf.mxu1 }
 0xa9c   : > { %v2087_v35 = vpop.permute.xlu0 %2086 }
 0xa9d   : > { %v2098_v36 = vsel %vm2097_vm4, %v2095_v34, %v2087_v35 }
 0xa9e   : > { %2899 = vmatprep.mubr.msk.f32.mxu0 %vm663_vm1, %v2098_v36 }
 0xaa0   : > { %v2089_v39 = vpop.permute.xlu1 %2088 }
 0xaa1   : > { %v2099_v40 = vsel %vm2097_vm4, %v2096_v38, %v2089_v39  ;;  %v2726_v39 = vld [vmem:[%s627_s28] ss:$0 sm:$0xff] }
 0xaa2   : > { %2900 = vmatmul.mubr.msk.f32.vlgmr.msra.gmra.mxu0 %vm663_vm1, %v2099_v40 }
 0xaa3   : > { %2914 = vmatpush3.msra.mxu0 %v2348_v16 }
 0xaa4   : > { %2915 = vmatprep.subr.mxu0 %v2347_v18 }
 0xaa5   : > { %2916 = vmatpush3.msra.mxu0 %v2347_v18 }
 0xaa6   : > { %2917 = vmatprep.subr.mxu0 %v2346_v19 }
 0xaa7   : > { %2918 = vmatpush3.msra.mxu0 %v2346_v19 }
 0xaa8   : > { %2919 = vmatprep.subr.mxu0 %v2345_v20 }
 0xaa9   : > { %2920 = vmatpush3.msra.mxu0 %v2345_v20 }
 0xaaa   : > { %2921 = vmatprep.subr.mxu0 %v2344_v21 }
 0xaab   : > { %2922 = vmatpush3.msra.mxu0 %v2344_v21 }
 0xaac   : > { %2923 = vmatprep.subr.mxu0 %v2343_v22 }
 0xaad   : > { %2924 = vmatpush3.msra.mxu0 %v2343_v22 }
 0xaae   : > { %2925 = vmatprep.subr.mxu0 %v2342_v23 }
 0xaaf   : > { %2926 = vmatpush3.msra.mxu0 %v2342_v23 }
 0xab0   : > { %2927 = vmatprep.subr.mxu0 %v2341_v13 }
 0xab1   : > { %2928 = vmatpush3.msra.mxu0 %v2341_v13 }
 0xb62   : > { %v2901_v17 = vpop.f32.mrf.mxu0 }
 0xb63   : > { %v2189_v41 = vadd.f32 %v2901_v17, %v2718_v46 }
 0xb64   : > { %v2183_v42 = vpop.f32.mrf.mxu0 }
 0xb65   : > { %v2184_v43 = vadd.f32 %v2718_v46, %v2183_v42  ;;  %v2193_v44 = vadd.f32 %v2189_v41, %v3315_v7 }
 0xb67   : > { %v2199_v45 = vsel %vm663_vm1, %v2193_v44, 0.0  ;;  %v2192_v48 = vadd.f32 %v2184_v43, %v3311_v4 }
 0xb68   : > { %2200 = vadd.xlane.f32.xlu1 %v2199_v45 }
 0xb69   : > { %v2196_v47 = vsel %vm663_vm1, %v2192_v48, 0.0 }
 0xb6a   : > { %2197 = vadd.xlane.f32.xlu0 %v2196_v47 }
 0xbf1   : > { %v2201_v49 = vpop.xlane.xlu1 %2200 }
 0xbf2   : > { %v2204_v50 = vmul.f32 0.03125, %v2201_v49 }
 0xbf3   : > { %v2198_v51 = vpop.xlane.xlu0 %2197 }
 0xbf4   : > { %v2203_v15 = vmul.f32 0.03125, %v2198_v51  ;;  %v2206_v52 = vsub.f32 %v2193_v44, %v2204_v50 }
 0xbf6   : > { %v2205_v53 = vsub.f32 %v2192_v48, %v2203_v15  ;;  %v2208_v55 = vmul.f32 %v2206_v52, %v2206_v52 }
 0xbf8   : > { %v2207_v54 = vmul.f32 %v2205_v53, %v2205_v53  ;;  %v2212_v4 = vsel %vm663_vm1, %v2208_v55, 0.0 }
 0xbfa   : > { %v2209_v7 = vsel %vm663_vm1, %v2207_v54, 0.0 }
 0xbfb   : > { %2210 = vadd.xlane.f32.xlu0 %v2209_v7 }
 0xbff   : > { %2213 = vadd.xlane.f32.xlu0 %v2212_v4 }
 0xc84   : > { %v2211_v60 = vpop.xlane.xlu0 %2210 }
 0xc85   : > { %v2215_v61 = vmul.f32 0.03125, %v2211_v60 }
 0xc87   : > { %v2217_v62 = vadd.f32 1e-05, %v2215_v61  ;;  %v2729_v61 = vld [vmem:[%s636_s14] ss:$0 sm:$0xff] }
 0xc88   : > { %v2214_v8 = vpop.xlane.xlu0 %2213 }
 0xc89   : > { %3025 = vrsqrt.f32 %v2217_v62  ;;  %v2216_v63 = vmul.f32 0.03125, %v2214_v8 }
 0xc8b   : > { %v2218_v0 = vadd.f32 1e-05, %v2216_v63  ;;  %v2730_v63 = vld [vmem:[%s639_s15] ss:$0 sm:$0xff] }
 0xc8d   : > { %3027 = vrsqrt.f32 %v2218_v0 }
 0xc96   : > { %v3026_v1 = vpop.eup %3025 }
 0xc97   : > { %v2221_v3 = vmul.f32 %v3026_v1, %v2205_v53 }
 0xc99   : > { %v2229_v12 = vmul.f32 %v2721_v2, %v2221_v3 }
 0xc9a   : > { %v3028_v6 = vpop.eup %3027 }
 0xc9b   : > { %v2222_v9 = vmul.f32 %v3028_v6, %v2206_v52  ;;  %v2237_v10 = vadd.f32 %v2722_v5, %v2229_v12 }
 0xc9d   : > { %v2230_v11 = vmul.f32 %v2721_v2, %v2222_v9  ;;  %2910 = vmatprep.mubr.msk.f32.mxu1 %vm663_vm1, %v2237_v10 }
 0xc9f   : > { %v2238_v14 = vadd.f32 %v2722_v5, %v2230_v11 }
 0xca1   : > { %2911 = vmatmul.mubr.msk.f32.vlgmr.msra.gmra.mxu1 %vm663_vm1, %v2238_v14 }
 0xd61   : > { %v2912_v25 = vpop.f32.mrf.mxu1 }
 0xd62   : > { %v2328_v26 = vadd.f32 %v2912_v25, %v2723_v24 }
 0xd63   : > { %v2322_v27 = vpop.f32.mrf.mxu1 }
 0xd64   : > { %v2334_v28 = vmul.f32 0.70710677, %v2328_v26  ;;  %v2323_v29 = vadd.f32 %v2723_v24, %v2322_v27  ;;  %v2332_v36 = vmul.f32 0.5, %v2328_v26 }
 0xd66   : > { %3029 = verf.f32 %v2334_v28  ;;  %v2333_v30 = vmul.f32 0.70710677, %v2323_v29  ;;  %v2331_v34 = vmul.f32 0.5, %v2323_v29 }
 0xd68   : > { %3031 = verf.f32 %v2333_v30 }
 0xd73   : > { %v3030_v31 = vpop.eup %3029 }
 0xd74   : > { %v2338_v33 = vadd.f32 1.0, %v3030_v31 }
 0xd75   : > { %v3032_v32 = vpop.eup %3031 }
 0xd76   : > { %v2337_v35 = vadd.f32 1.0, %v3032_v32  ;;  %v2340_v38 = vmul.f32 %v2338_v33, %v2332_v36 }
 0xd78   : > { %v2339_v37 = vmul.f32 %v2337_v35, %v2331_v34 }
 0xd7a   : > { %2929 = vmatprep.mubr.msk.f32.mxu0 %vm2356_vm6, %v2339_v37 }
 0xd7b   : > { %2930 = vmatmul.mubr.msk.f32.vlgmr.msra.gmra.mxu0 %vm2356_vm6, %v2340_v38 }
 0xe3b   : > { %v2931_v40 = vpop.f32.mrf.mxu0 }
 0xe3c   : > { %v2435_v46 = vadd.f32 %v2931_v40, %v2726_v39 }
 0xe3d   : > { %v2429_v17 = vpop.f32.mrf.mxu0 }
 0xe3e   : > { %v2430_v41 = vadd.f32 %v2726_v39, %v2429_v17  ;;  %v2439_v42 = vadd.f32 %v2435_v46, %v2238_v14 }
 0xe40   : > { %v2445_v43 = vsel %vm663_vm1, %v2439_v42, 0.0  ;;  %v2438_v44 = vadd.f32 %v2430_v41, %v2237_v10 }
 0xe41   : > { %2446 = vadd.xlane.f32.xlu0 %v2445_v43 }
 0xe42   : > { %v2442_v45 = vsel %vm663_vm1, %v2438_v44, 0.0 }
 0xe43   : > { %2443 = vadd.xlane.f32.xlu1 %v2442_v45 }
 0xeca   : > { %v2447_v48 = vpop.xlane.xlu0 %2446 }
 0xecb   : > { %v2449_v47 = vmul.f32 0.03125, %v2447_v48 }
 0xecc   : > { %v2444_v49 = vpop.xlane.xlu1 %2443 }
 0xecd   : > { %v2451_v50 = vsub.f32 %v2439_v42, %v2449_v47  ;;  %v2448_v51 = vmul.f32 0.03125, %v2444_v49 }
 0xecf   : > { %v2450_v15 = vsub.f32 %v2438_v44, %v2448_v51  ;;  %v2453_v52 = vmul.f32 %v2451_v50, %v2451_v50 }
 0xed1   : > { %v2457_v53 = vsel %vm663_vm1, %v2453_v52, 0.0  ;;  %v2452_v54 = vmul.f32 %v2450_v15, %v2450_v15 }
 0xed2   : > { %2458 = vadd.xlane.f32.xlu0 %v2457_v53 }
 0xed3   : > { %v2454_v7 = vsel %vm663_vm1, %v2452_v54, 0.0 }
 0xed4   : > { %2455 = vadd.xlane.f32.xlu1 %v2454_v7 }
 0xf5b   : > { %v2459_v55 = vpop.xlane.xlu0 %2458 }
 0xf5c   : > { %v2461_v4 = vmul.f32 0.03125, %v2459_v55 }
 0xf5d   : > { %v2456_v56 = vpop.xlane.xlu1 %2455 }
 0xf5e   : > { %v2463_v57 = vadd.f32 1e-05, %v2461_v4  ;;  %v2460_v58 = vmul.f32 0.03125, %v2456_v56 }
 0xf60   : > { %3033 = vrsqrt.f32 %v2463_v57  ;;  %v2462_v59 = vadd.f32 1e-05, %v2460_v58 }
 0xf62   : > { %3035 = vrsqrt.f32 %v2462_v59 }
 0xf6d   : > { %v3034_v60 = vpop.eup %3033 }
 0xf6e   : > { %v2467_v62 = vmul.f32 %v3034_v60, %v2451_v50 }
 0xf6f   : > { %v3036_v8 = vpop.eup %3035 }
 0xf70   : > { %v2475_v0 = vmul.f32 %v2729_v61, %v2467_v62  ;;  %v2466_v1 = vmul.f32 %v3036_v8, %v2450_v15 }
 0xf72   : > { %v2483_v2 = vadd.f32 %v2730_v63, %v2475_v0  ;;  %v2474_v3 = vmul.f32 %v2729_v61, %v2466_v1  ;;  %2489 = sbr.rel (%p2731_p3) target bundleno = 3960 (0xf78), region = 84 }
 0xf74   : > { %2485 = vst.msk [vmem:[#allocation2 + $0x8] sm:$0xff] %vm663_vm1, %v2483_v2  ;;  %v2482_v5 = vadd.f32 %v2730_v63, %v2474_v3 }
 0xf76   : > { %2484 = vst.msk [vmem:[#allocation2] sm:$0xff] %vm663_vm1, %v2482_v5 }
 0xf77   : > { %2490 = vst.msk [vmem:[#allocation6] sm:$0xff] %vm663_vm1, %v2482_v5  ;;  %2491 = vst.msk [vmem:[#allocation6 + $0x8] sm:$0xff] %vm663_vm1, %v2483_v2 }
 0xf78 PF: > { %s3593_s14 = sld [smem:[#allocation10_spill]]  ;;  %s3138_s16 = smov [#allocation6]  }
 0xf79   : > { %s2501_s20 = sshll.u32 %s3138_s16, 4  ;;  %s2502_s20 = int_to_ptr.vmem [resolvable:$true] %s2501_s20 }
 0xf7a   : > { %s3063_s19 = scalar_lea.vmem %s2502_s20, 256  ;;  %p3070_p8 = scmp.lt.s32.totalorder %s2502_s20, %s2502_s20 }
 0xf7b   : > { %p3064_p5 = scmp.ne.s32.totalorder %s2502_s20, %s3063_s19  ;;  %p3071_p9 = scmp.lt.s32.totalorder %s3063_s19, %s3063_s19 }
 0xf7d   : > { %p3072_p10 = por %p3071_p9, %p3070_p8 }
 0xf7e   : > { %s3594_s22 = sadd.s32 4294967295, %s3593_s14  }
 0xf7f   : > { %p3534_p4 = scmp.eq.s32.totalorder %s3594_s22, 1 }
 0xf81   : > { %p3065_p6 = pnand %p3064_p5, %p3534_p4 }
 0xf83   : > { %p3066_p7 = pneg %p3065_p6 }
 0xf85   : > { %p3073_p11 = pnand %p3072_p10, %p3066_p7 }
 0xf87   : > { %3076 = shalt.err (!%p3073_p11)
}
 0xf88   : > { %s3139_s25 = smov 128   ;;  %s3596_s23 = sld [smem:[#allocation16_spill]] }
 0xf8e   : > { %2937 = dma.vmem_to_hbm [thread:$0]  (%p3534_p4), %s2502_s20, 256, %s3596_s23, [#allocation5], %s3139_s25, %s3139_s25, %s3135_s27  }
 0xf8f   : > { %3104 = dma.done.wait (%p3534_p4), [#allocation5], 256  }
 0xf90   : > { %3106 = vsyncadd (%p3534_p4), [#allocation5], 4294967040 }
 0xf91 PF: > { %s3597_s13 = sld [smem:[#allocation10_spill]] }
 0xf92   : > { %s3598_s25 = sld [smem:[#allocation9_spill]] }
 0xf93   : > { %s3599_s26 = sld [smem:[#allocation11_spill]] }
 0xf97   : > { %s25_s27 = sadd.s32 1, %s3597_s13  }
 0xf98   : > { %p22_p12 = scmp.ge.s32.totalorder %s25_s27, 4  }
 0xf9a   :  { %24 = sbr.rel (!%p22_p12) target bundleno = 9 (0x9), region = 147 }
 0xf9f   :  { %2517 = vsyncpa [#allocation4], 1 }
 0xfa0   :  { %2519 = vsyncpa [#allocation4 + $0x1], 1 }
 0xfa1   :  { %2520 = vsyncpa [#allocation5], 1 }
 0xfa2   :  { %2522 = vsyncpa [#allocation5 + $0x1], 1 }

</bundles_post_ra>
